<compile_context>
chip_gen: v6e
topology: v6e:2x2x1
jax: 0.10.0
libtpu: 0.0.40
codegen_flags: <defaults>
</compile_context>

<pallas_src>
import functools

import numpy as np

import jax
import jax.numpy as jnp
from jax.experimental import pallas as pl
from jax.experimental.pallas import tpu as pltpu


def convlstm_cell_kernel(comb_ref, w_ref, b_ref, mask_ref, c_ref,
                         h_out_ref, c_out_ref, rhs_ref, acc_ref, *,
                         kh, kw, hidden_dim, cpad, width, npos, ext, nb):
    # comb_ref : (nb, cpad, npos + 2*ext) bf16  [x ; h], flat H*W axis, flat-padded
    # w_ref    : (4*hid, kh*kw*cpad)      bf16  tap-major folded conv weights
    # b_ref    : (4*hid, 1)               f32
    # mask_ref : (kw, npos)               bf16  0/1 lane masks per column offset
    # c_ref    : (nb, hid, npos)          f32
    # outputs  : (nb, hid, npos)          f32
    # rhs_ref  : VMEM (kh*kw*cpad, nb*npos) bf16  im2col scratch (all batches)
    # acc_ref  : VMEM (4*hid, nb*npos)      f32   conv accumulator
    hd = hidden_dim

    # --- im2col: each tap is a static lane window of the flat input --------
    # dy (row offset) out-of-range reads land in the flat zero padding; dx
    # (column offset) wrap-around into the neighbouring row is zeroed by the
    # per-tap lane mask.
    for b in range(nb):
        for ky in range(kh):
            dy = ky - kh // 2
            for kx in range(kw):
                dx = kx - kw // 2
                tap = ky * kw + kx
                start = ext + dy * width + dx
                window = comb_ref[b, :, start:start + npos]
                if dx != 0:
                    window = window * mask_ref[kx:kx + 1, :]
                rhs_ref[tap * cpad:(tap + 1) * cpad,
                        b * npos:(b + 1) * npos] = window

    # --- one big MXU matmul: (4*hid, K) x (K, nb*npos), f32 accumulate -----
    acc_ref[...] = (
        jnp.dot(w_ref[...], rhs_ref[...], preferred_element_type=jnp.float32)
        + b_ref[...])

    # --- fused LSTM gate math (channel-major, lane-dense) ------------------
    for b in range(nb):
        lo = b * npos
        i = jax.nn.sigmoid(acc_ref[0 * hd:1 * hd, lo:lo + npos])
        f = jax.nn.sigmoid(acc_ref[1 * hd:2 * hd, lo:lo + npos])
        o = jax.nn.sigmoid(acc_ref[2 * hd:3 * hd, lo:lo + npos])
        g = jnp.tanh(acc_ref[3 * hd:4 * hd, lo:lo + npos])

        c_next = f * c_ref[b] + i * g
        h_next = o * jnp.tanh(c_next)

        c_out_ref[b] = c_next
        h_out_ref[b] = h_next


def _batch_block(n):
    """Batch elements per grid step.

    Fold the whole batch into one grid step on known single-TensorCore chips
    (v5e / v6e); otherwise (v7x and friends) keep a per-batch parallel grid
    axis so multiple TensorCores can split it.
    """
    try:
        kind = jax.devices()[0].device_kind.lower()
    except Exception:
        return 1
    single_tc = ("v5 lite" in kind or "v5e" in kind or
                 "v6 lite" in kind or "v6e" in kind)
    return n if single_tc else 1


def convlstm_cell_forward(x, h, c, weight, bias, kernel_size):
    """Pallas ConvLSTMCell forward. Inputs/outputs are NCHW (PyTorch conv.)."""
    n, cin, height, width = x.shape
    hid = h.shape[1]
    kh, kw = kernel_size
    ph, pw = kh // 2, kw // 2
    npos = height * width
    ext = ph * width + pw                    # max |flat shift| of any tap
    lext = npos + 2 * ext
    ctot = cin + hid
    cpad = ((ctot + 15) // 16) * 16          # bf16-sublane-aligned tap blocks
    kdim = kh * kw * cpad

    # ---- input prep: channel-major, no spatial padding, no transposes ------
    comb = jnp.concatenate([x, h], axis=1).astype(jnp.bfloat16)   # (N,Ctot,H,W)
    comb = comb.reshape(n, ctot, npos)
    comb = jnp.pad(comb, ((0, 0), (0, cpad - ctot), (ext, ext)))  # (N,cpad,Lext)

    c_flat = c.reshape(n, hid, npos).astype(jnp.float32)          # free reshape

    # PyTorch Conv2d weight (4*hid, Ctot, kh, kw) -> (4*hid, kh*kw*cpad), bf16.
    w = jnp.transpose(weight, (0, 2, 3, 1))                # (4*hid, kh, kw, Ctot)
    w = jnp.pad(w, ((0, 0), (0, 0), (0, 0), (0, cpad - ctot)))
    w = w.reshape(4 * hid, kdim).astype(jnp.bfloat16)
    b_col = bias.reshape(4 * hid, 1).astype(jnp.float32)

    # W-direction boundary masks: a flat shift of dx = kx - pw wraps across
    # image rows; zero those lanes.  Static, computed host-side.
    col = np.arange(npos) % width
    mask_np = np.stack(
        [((col + (kx - pw) >= 0) & (col + (kx - pw) < width))
         for kx in range(kw)], axis=0).astype(np.float32)
    mask = jnp.asarray(mask_np, dtype=jnp.bfloat16)               # (kw, npos)

    nb = _batch_block(n)
    grid = (n // nb,)

    kern = functools.partial(
        convlstm_cell_kernel, kh=kh, kw=kw, hidden_dim=hid, cpad=cpad,
        width=width, npos=npos, ext=ext, nb=nb)

    h_flat, c_next_flat = pl.pallas_call(
        kern,
        out_shape=(
            jax.ShapeDtypeStruct((n, hid, npos), jnp.float32),
            jax.ShapeDtypeStruct((n, hid, npos), jnp.float32),
        ),
        grid_spec=pltpu.PrefetchScalarGridSpec(
            num_scalar_prefetch=0,
            grid=grid,
            in_specs=[
                pl.BlockSpec((nb, cpad, lext), lambda b: (b, 0, 0)),
                pl.BlockSpec((4 * hid, kdim), lambda b: (0, 0)),
                pl.BlockSpec((4 * hid, 1), lambda b: (0, 0)),
                pl.BlockSpec((kw, npos), lambda b: (0, 0)),
                pl.BlockSpec((nb, hid, npos), lambda b: (b, 0, 0)),
            ],
            out_specs=[
                pl.BlockSpec((nb, hid, npos), lambda b: (b, 0, 0)),
                pl.BlockSpec((nb, hid, npos), lambda b: (b, 0, 0)),
            ],
            scratch_shapes=[
                pltpu.VMEM((kdim, nb * npos), jnp.bfloat16),   # im2col RHS
                pltpu.VMEM((4 * hid, nb * npos), jnp.float32),  # conv accum
            ],
        ),
        compiler_params=pltpu.CompilerParams(
            dimension_semantics=("parallel",)),
    )(comb, w, b_col, mask, c_flat)

    # Outputs are already channel-major & unpadded -> contiguous reshape only.
    h_next = h_flat.reshape(n, hid, height, width)
    c_next = c_next_flat.reshape(n, hid, height, width)
    return h_next, c_next


def convlstm_cell_reference(x, h, c, weight, bias, kernel_size,
                            matmul_dtype=jnp.float32):
    """Pure-JAX reference matching the PyTorch forward (NCHW).

    matmul_dtype=bfloat16 reproduces the kernel's bf16-operand / f32-accumulate
    convolution for a tight structural comparison.
    """
    kh, kw = kernel_size
    ph, pw = kh // 2, kw // 2
    comb = jnp.concatenate([x, h], axis=1).astype(matmul_dtype)
    conv = jax.lax.conv_general_dilated(
        comb, weight.astype(matmul_dtype), window_strides=(1, 1),
        padding=((ph, ph), (pw, pw)),
        dimension_numbers=("NCHW", "OIHW", "NCHW"),
        preferred_element_type=jnp.float32)
    conv = conv + bias[None, :, None, None]
    cc_i, cc_f, cc_o, cc_g = jnp.split(conv, 4, axis=1)
    i = jax.nn.sigmoid(cc_i)
    f = jax.nn.sigmoid(cc_f)
    o = jax.nn.sigmoid(cc_o)
    g = jnp.tanh(cc_g)
    c_next = f * c + i * g
    h_next = o * jnp.tanh(c_next)
    return h_next, c_next


if __name__ == "__main__":
    # Module config (mirrors ConvLSTMCell(input_dim=4, hidden_dim=32, (3,3)))
    batch = 2
    input_dim = 4
    hidden_dim = 32
    H = W = 16
    kernel_size = (3, 3)

    key = jax.random.PRNGKey(0)
    k_x, k_h, k_c, k_w, k_b = jax.random.split(key, 5)

    x = jax.random.normal(k_x, (batch, input_dim, H, W), jnp.float32)
    h0 = jax.random.normal(k_h, (batch, hidden_dim, H, W), jnp.float32)
    c0 = jax.random.normal(k_c, (batch, hidden_dim, H, W), jnp.float32)

    in_ch = input_dim + hidden_dim
    weight = 0.05 * jax.random.normal(
        k_w, (4 * hidden_dim, in_ch, kernel_size[0], kernel_size[1]),
        jnp.float32)
    bias = 0.05 * jax.random.normal(k_b, (4 * hidden_dim,), jnp.float32)

    fwd = jax.jit(functools.partial(convlstm_cell_forward,
                                    kernel_size=kernel_size))
    h_next, c_next = fwd(x, h0, c0, weight, bias)
    jax.block_until_ready((h_next, c_next))

    assert h_next.shape == (batch, hidden_dim, H, W)
    assert c_next.shape == (batch, hidden_dim, H, W)

    # Tight structural check: reference conv also uses bf16 operands with f32
    # accumulation (same products the kernel's MXU computes).
    h_bf, c_bf = convlstm_cell_reference(x, h0, c0, weight, bias, kernel_size,
                                         matmul_dtype=jnp.bfloat16)
    assert jnp.allclose(h_next, h_bf, atol=1e-3, rtol=1e-3)
    assert jnp.allclose(c_next, c_bf, atol=1e-3, rtol=1e-3)

    # Semantics check vs the full-f32 reference; tolerance reflects the bf16
    # matmul operands (K=324 contraction), not kernel structure.
    h_ref, c_ref = convlstm_cell_reference(x, h0, c0, weight, bias,
                                           kernel_size)
    assert jnp.allclose(h_next, h_ref, atol=5e-2, rtol=5e-2)
    assert jnp.allclose(c_next, c_ref, atol=5e-2, rtol=5e-2)

    print("KERNEL_OK")
</pallas_src>

<mosaic_0001>
module attributes {stable_mosaic.version = 11 : i64} {
  func.func @convlstm_cell_kernel(%arg0: i32, %arg1: memref<1x48x290xbf16, #tpu.memory_space<vmem>>, %arg2: memref<128x432xbf16, #tpu.memory_space<vmem>>, %arg3: memref<128x1xf32, #tpu.memory_space<vmem>>, %arg4: memref<3x256xbf16, #tpu.memory_space<vmem>>, %arg5: memref<1x32x256xf32, #tpu.memory_space<vmem>>, %arg6: memref<1x32x256xf32, #tpu.memory_space<vmem>>, %arg7: memref<1x32x256xf32, #tpu.memory_space<vmem>>, %arg8: memref<432x256xbf16, #tpu.memory_space<vmem>>, %arg9: memref<128x256xf32, #tpu.memory_space<vmem>>) attributes {dimension_semantics = [#tpu.dimension_semantics<parallel>], iteration_bounds = array<i64: 2>, scalar_prefetch = 0 : i64, scratch_operands = 2 : i64, tpu.core_type = #tpu.core_type<tc>, window_params = [{transform_indices = @transform_0, window_bounds = array<i64: 1, 48, 290>}, {pipeline_mode = #tpu.pipeline_mode<synchronous>, transform_indices = @transform_1, window_bounds = array<i64: 128, 432>}, {pipeline_mode = #tpu.pipeline_mode<synchronous>, transform_indices = @transform_2, window_bounds = array<i64: 128, 1>}, {pipeline_mode = #tpu.pipeline_mode<synchronous>, transform_indices = @transform_3, window_bounds = array<i64: 3, 256>}, {transform_indices = @transform_4, window_bounds = array<i64: 1, 32, 256>}, {transform_indices = @transform_5, window_bounds = array<i64: 1, 32, 256>}, {transform_indices = @transform_6, window_bounds = array<i64: 1, 32, 256>}]} {
    %c0 = arith.constant 0 : index
    %c0_0 = arith.constant 0 : index
    %c0_1 = arith.constant 0 : index
    %0 = vector.load %arg1[%c0, %c0_0, %c0_1] : memref<1x48x290xbf16, #tpu.memory_space<vmem>>, vector<1x48x256xbf16>
    %1 = vector.shape_cast %0 : vector<1x48x256xbf16> to vector<48x256xbf16>
    %c0_2 = arith.constant 0 : index
    %c0_3 = arith.constant 0 : index
    %2 = vector.load %arg4[%c0_2, %c0_3] : memref<3x256xbf16, #tpu.memory_space<vmem>>, vector<1x256xbf16>
    %3 = vector.broadcast %2 : vector<1x256xbf16> to vector<48x256xbf16>
    %4 = arith.mulf %1, %3 : vector<48x256xbf16>
    %c0_4 = arith.constant 0 : index
    %c0_5 = arith.constant 0 : index
    %5 = vector.load %arg8[%c0_4, %c0_5] : memref<432x256xbf16, #tpu.memory_space<vmem>>, vector<48x256xbf16>
    tpu.vector_store %arg8[%c0_4, %c0_5], %4 {strides = array<i32>} : memref<432x256xbf16, #tpu.memory_space<vmem>>, vector<48x256xbf16>,
    %c0_6 = arith.constant 0 : index
    %c0_7 = arith.constant 0 : index
    %c1 = arith.constant 1 : index
    %6 = vector.load %arg1[%c0_6, %c0_7, %c1] : memref<1x48x290xbf16, #tpu.memory_space<vmem>>, vector<1x48x256xbf16>
    %7 = vector.shape_cast %6 : vector<1x48x256xbf16> to vector<48x256xbf16>
    %c48 = arith.constant 48 : index
    %c0_8 = arith.constant 0 : index
    %8 = vector.load %arg8[%c48, %c0_8] : memref<432x256xbf16, #tpu.memory_space<vmem>>, vector<48x256xbf16>
    tpu.vector_store %arg8[%c48, %c0_8], %7 {strides = array<i32>} : memref<432x256xbf16, #tpu.memory_space<vmem>>, vector<48x256xbf16>,
    %c0_9 = arith.constant 0 : index
    %c0_10 = arith.constant 0 : index
    %c2 = arith.constant 2 : index
    %9 = vector.load %arg1[%c0_9, %c0_10, %c2] : memref<1x48x290xbf16, #tpu.memory_space<vmem>>, vector<1x48x256xbf16>
    %10 = vector.shape_cast %9 : vector<1x48x256xbf16> to vector<48x256xbf16>
    %c2_11 = arith.constant 2 : index
    %c0_12 = arith.constant 0 : index
    %11 = vector.load %arg4[%c2_11, %c0_12] : memref<3x256xbf16, #tpu.memory_space<vmem>>, vector<1x256xbf16>
    %12 = vector.broadcast %11 : vector<1x256xbf16> to vector<48x256xbf16>
    %13 = arith.mulf %10, %12 : vector<48x256xbf16>
    %c96 = arith.constant 96 : index
    %c0_13 = arith.constant 0 : index
    %14 = vector.load %arg8[%c96, %c0_13] : memref<432x256xbf16, #tpu.memory_space<vmem>>, vector<48x256xbf16>
    tpu.vector_store %arg8[%c96, %c0_13], %13 {strides = array<i32>} : memref<432x256xbf16, #tpu.memory_space<vmem>>, vector<48x256xbf16>,
    %c0_14 = arith.constant 0 : index
    %c0_15 = arith.constant 0 : index
    %c16 = arith.constant 16 : index
    %15 = vector.load %arg1[%c0_14, %c0_15, %c16] : memref<1x48x290xbf16, #tpu.memory_space<vmem>>, vector<1x48x256xbf16>
    %16 = vector.shape_cast %15 : vector<1x48x256xbf16> to vector<48x256xbf16>
    %c0_16 = arith.constant 0 : index
    %c0_17 = arith.constant 0 : index
    %17 = vector.load %arg4[%c0_16, %c0_17] : memref<3x256xbf16, #tpu.memory_space<vmem>>, vector<1x256xbf16>
    %18 = vector.broadcast %17 : vector<1x256xbf16> to vector<48x256xbf16>
    %19 = arith.mulf %16, %18 : vector<48x256xbf16>
    %c144 = arith.constant 144 : index
    %c0_18 = arith.constant 0 : index
    %20 = vector.load %arg8[%c144, %c0_18] : memref<432x256xbf16, #tpu.memory_space<vmem>>, vector<48x256xbf16>
    tpu.vector_store %arg8[%c144, %c0_18], %19 {strides = array<i32>} : memref<432x256xbf16, #tpu.memory_space<vmem>>, vector<48x256xbf16>,
    %c0_19 = arith.constant 0 : index
    %c0_20 = arith.constant 0 : index
    %c17 = arith.constant 17 : index
    %21 = vector.load %arg1[%c0_19, %c0_20, %c17] : memref<1x48x290xbf16, #tpu.memory_space<vmem>>, vector<1x48x256xbf16>
    %22 = vector.shape_cast %21 : vector<1x48x256xbf16> to vector<48x256xbf16>
    %c192 = arith.constant 192 : index
    %c0_21 = arith.constant 0 : index
    %23 = vector.load %arg8[%c192, %c0_21] : memref<432x256xbf16, #tpu.memory_space<vmem>>, vector<48x256xbf16>
    tpu.vector_store %arg8[%c192, %c0_21], %22 {strides = array<i32>} : memref<432x256xbf16, #tpu.memory_space<vmem>>, vector<48x256xbf16>,
    %c0_22 = arith.constant 0 : index
    %c0_23 = arith.constant 0 : index
    %c18 = arith.constant 18 : index
    %24 = vector.load %arg1[%c0_22, %c0_23, %c18] : memref<1x48x290xbf16, #tpu.memory_space<vmem>>, vector<1x48x256xbf16>
    %25 = vector.shape_cast %24 : vector<1x48x256xbf16> to vector<48x256xbf16>
    %c2_24 = arith.constant 2 : index
    %c0_25 = arith.constant 0 : index
    %26 = vector.load %arg4[%c2_24, %c0_25] : memref<3x256xbf16, #tpu.memory_space<vmem>>, vector<1x256xbf16>
    %27 = vector.broadcast %26 : vector<1x256xbf16> to vector<48x256xbf16>
    %28 = arith.mulf %25, %27 : vector<48x256xbf16>
    %c240 = arith.constant 240 : index
    %c0_26 = arith.constant 0 : index
    %29 = vector.load %arg8[%c240, %c0_26] : memref<432x256xbf16, #tpu.memory_space<vmem>>, vector<48x256xbf16>
    tpu.vector_store %arg8[%c240, %c0_26], %28 {strides = array<i32>} : memref<432x256xbf16, #tpu.memory_space<vmem>>, vector<48x256xbf16>,
    %c0_27 = arith.constant 0 : index
    %c0_28 = arith.constant 0 : index
    %c32 = arith.constant 32 : index
    %30 = vector.load %arg1[%c0_27, %c0_28, %c32] : memref<1x48x290xbf16, #tpu.memory_space<vmem>>, vector<1x48x256xbf16>
    %31 = vector.shape_cast %30 : vector<1x48x256xbf16> to vector<48x256xbf16>
    %c0_29 = arith.constant 0 : index
    %c0_30 = arith.constant 0 : index
    %32 = vector.load %arg4[%c0_29, %c0_30] : memref<3x256xbf16, #tpu.memory_space<vmem>>, vector<1x256xbf16>
    %33 = vector.broadcast %32 : vector<1x256xbf16> to vector<48x256xbf16>
    %34 = arith.mulf %31, %33 : vector<48x256xbf16>
    %c288 = arith.constant 288 : index
    %c0_31 = arith.constant 0 : index
    %35 = vector.load %arg8[%c288, %c0_31] : memref<432x256xbf16, #tpu.memory_space<vmem>>, vector<48x256xbf16>
    tpu.vector_store %arg8[%c288, %c0_31], %34 {strides = array<i32>} : memref<432x256xbf16, #tpu.memory_space<vmem>>, vector<48x256xbf16>,
    %c0_32 = arith.constant 0 : index
    %c0_33 = arith.constant 0 : index
    %c33 = arith.constant 33 : index
    %36 = vector.load %arg1[%c0_32, %c0_33, %c33] : memref<1x48x290xbf16, #tpu.memory_space<vmem>>, vector<1x48x256xbf16>
    %37 = vector.shape_cast %36 : vector<1x48x256xbf16> to vector<48x256xbf16>
    %c336 = arith.constant 336 : index
    %c0_34 = arith.constant 0 : index
    %38 = vector.load %arg8[%c336, %c0_34] : memref<432x256xbf16, #tpu.memory_space<vmem>>, vector<48x256xbf16>
    tpu.vector_store %arg8[%c336, %c0_34], %37 {strides = array<i32>} : memref<432x256xbf16, #tpu.memory_space<vmem>>, vector<48x256xbf16>,
    %c0_35 = arith.constant 0 : index
    %c0_36 = arith.constant 0 : index
    %c34 = arith.constant 34 : index
    %39 = vector.load %arg1[%c0_35, %c0_36, %c34] : memref<1x48x290xbf16, #tpu.memory_space<vmem>>, vector<1x48x256xbf16>
    %40 = vector.shape_cast %39 : vector<1x48x256xbf16> to vector<48x256xbf16>
    %c2_37 = arith.constant 2 : index
    %c0_38 = arith.constant 0 : index
    %41 = vector.load %arg4[%c2_37, %c0_38] : memref<3x256xbf16, #tpu.memory_space<vmem>>, vector<1x256xbf16>
    %42 = vector.broadcast %41 : vector<1x256xbf16> to vector<48x256xbf16>
    %43 = arith.mulf %40, %42 : vector<48x256xbf16>
    %c384 = arith.constant 384 : index
    %c0_39 = arith.constant 0 : index
    %44 = vector.load %arg8[%c384, %c0_39] : memref<432x256xbf16, #tpu.memory_space<vmem>>, vector<48x256xbf16>
    tpu.vector_store %arg8[%c384, %c0_39], %43 {strides = array<i32>} : memref<432x256xbf16, #tpu.memory_space<vmem>>, vector<48x256xbf16>,
    %c0_40 = arith.constant 0 : index
    %c0_41 = arith.constant 0 : index
    %45 = vector.load %arg2[%c0_40, %c0_41] : memref<128x432xbf16, #tpu.memory_space<vmem>>, vector<128x432xbf16>
    %c0_42 = arith.constant 0 : index
    %c0_43 = arith.constant 0 : index
    %46 = vector.load %arg8[%c0_42, %c0_43] : memref<432x256xbf16, #tpu.memory_space<vmem>>, vector<432x256xbf16>
    %cst = arith.constant dense<0.000000e+00> : vector<128x256xf32>
    %47 = tpu.matmul %45, %46, %cst {dimension_numbers = #tpu.dot_dimension_numbers<[1], [0], [0], [1], [0, 0, 1, 1], [], []>} : vector<128x432xbf16>, vector<432x256xbf16>, vector<128x256xf32> -> vector<128x256xf32>
    %c0_44 = arith.constant 0 : index
    %c0_45 = arith.constant 0 : index
    %48 = vector.load %arg3[%c0_44, %c0_45] : memref<128x1xf32, #tpu.memory_space<vmem>>, vector<128x1xf32>
    %49 = vector.broadcast %48 : vector<128x1xf32> to vector<128x256xf32>
    %50 = arith.addf %47, %49 : vector<128x256xf32>
    %c0_46 = arith.constant 0 : index
    %c0_47 = arith.constant 0 : index
    %51 = vector.load %arg9[%c0_46, %c0_47] : memref<128x256xf32, #tpu.memory_space<vmem>>, vector<128x256xf32>
    tpu.vector_store %arg9[%c0_46, %c0_47], %50 {strides = array<i32>} : memref<128x256xf32, #tpu.memory_space<vmem>>, vector<128x256xf32>,
    %c0_48 = arith.constant 0 : index
    %c0_49 = arith.constant 0 : index
    %52 = vector.load %arg9[%c0_48, %c0_49] : memref<128x256xf32, #tpu.memory_space<vmem>>, vector<32x256xf32>
    %53 = arith.negf %52 : vector<32x256xf32>
    %54 = math.exp %53 : vector<32x256xf32>
    %cst_50 = arith.constant 1.000000e+00 : f32
    %55 = vector.broadcast %cst_50 : f32 to vector<32x256xf32>
    %56 = arith.addf %55, %54 : vector<32x256xf32>
    %57 = arith.divf %55, %56 : vector<32x256xf32>
    %c32_51 = arith.constant 32 : index
    %c0_52 = arith.constant 0 : index
    %58 = vector.load %arg9[%c32_51, %c0_52] : memref<128x256xf32, #tpu.memory_space<vmem>>, vector<32x256xf32>
    %59 = arith.negf %58 : vector<32x256xf32>
    %60 = math.exp %59 : vector<32x256xf32>
    %cst_53 = arith.constant 1.000000e+00 : f32
    %61 = vector.broadcast %cst_53 : f32 to vector<32x256xf32>
    %62 = arith.addf %61, %60 : vector<32x256xf32>
    %63 = arith.divf %61, %62 : vector<32x256xf32>
    %c64 = arith.constant 64 : index
    %c0_54 = arith.constant 0 : index
    %64 = vector.load %arg9[%c64, %c0_54] : memref<128x256xf32, #tpu.memory_space<vmem>>, vector<32x256xf32>
    %65 = arith.negf %64 : vector<32x256xf32>
    %66 = math.exp %65 : vector<32x256xf32>
    %cst_55 = arith.constant 1.000000e+00 : f32
    %67 = vector.broadcast %cst_55 : f32 to vector<32x256xf32>
    %68 = arith.addf %67, %66 : vector<32x256xf32>
    %69 = arith.divf %67, %68 : vector<32x256xf32>
    %c96_56 = arith.constant 96 : index
    %c0_57 = arith.constant 0 : index
    %70 = vector.load %arg9[%c96_56, %c0_57] : memref<128x256xf32, #tpu.memory_space<vmem>>, vector<32x256xf32>
    %71 = math.tanh %70 : vector<32x256xf32>
    %c0_58 = arith.constant 0 : index
    %c0_59 = arith.constant 0 : index
    %c0_60 = arith.constant 0 : index
    %72 = vector.load %arg5[%c0_58, %c0_59, %c0_60] : memref<1x32x256xf32, #tpu.memory_space<vmem>>, vector<1x32x256xf32>
    %73 = vector.shape_cast %72 : vector<1x32x256xf32> to vector<32x256xf32>
    %74 = arith.mulf %63, %73 : vector<32x256xf32>
    %75 = arith.mulf %57, %71 : vector<32x256xf32>
    %76 = arith.addf %74, %75 : vector<32x256xf32>
    %77 = math.tanh %76 : vector<32x256xf32>
    %78 = arith.mulf %69, %77 : vector<32x256xf32>
    %c0_61 = arith.constant 0 : index
    %c0_62 = arith.constant 0 : index
    %c0_63 = arith.constant 0 : index
    %79 = vector.load %arg7[%c0_61, %c0_62, %c0_63] : memref<1x32x256xf32, #tpu.memory_space<vmem>>, vector<1x32x256xf32>
    %80 = vector.shape_cast %79 : vector<1x32x256xf32> to vector<32x256xf32>
    %81 = vector.shape_cast %76 : vector<32x256xf32> to vector<1x32x256xf32>
    tpu.vector_store %arg7[%c0_61, %c0_62, %c0_63], %81 {strides = array<i32>} : memref<1x32x256xf32, #tpu.memory_space<vmem>>, vector<1x32x256xf32>,
    %c0_64 = arith.constant 0 : index
    %c0_65 = arith.constant 0 : index
    %c0_66 = arith.constant 0 : index
    %82 = vector.load %arg6[%c0_64, %c0_65, %c0_66] : memref<1x32x256xf32, #tpu.memory_space<vmem>>, vector<1x32x256xf32>
    %83 = vector.shape_cast %82 : vector<1x32x256xf32> to vector<32x256xf32>
    %84 = vector.shape_cast %78 : vector<32x256xf32> to vector<1x32x256xf32>
    tpu.vector_store %arg6[%c0_64, %c0_65, %c0_66], %84 {strides = array<i32>} : memref<1x32x256xf32, #tpu.memory_space<vmem>>, vector<1x32x256xf32>,
    return
  }
  func.func @transform_0(%arg0: i32) -> (i32, i32, i32) {
    %c0_i32 = arith.constant 0 : i32
    %c0_i32_0 = arith.constant 0 : i32
    %c0_i32_1 = arith.constant 0 : i32
    return %arg0, %c0_i32, %c0_i32_0 : i32, i32, i32
  }
  func.func @transform_1(%arg0: i32) -> (i32, i32) {
    %c0_i32 = arith.constant 0 : i32
    %c0_i32_0 = arith.constant 0 : i32
    %c0_i32_1 = arith.constant 0 : i32
    return %c0_i32, %c0_i32_0 : i32, i32
  }
  func.func @transform_2(%arg0: i32) -> (i32, i32) {
    %c0_i32 = arith.constant 0 : i32
    %c0_i32_0 = arith.constant 0 : i32
    %c0_i32_1 = arith.constant 0 : i32
    return %c0_i32, %c0_i32_0 : i32, i32
  }
  func.func @transform_3(%arg0: i32) -> (i32, i32) {
    %c0_i32 = arith.constant 0 : i32
    %c0_i32_0 = arith.constant 0 : i32
    %c0_i32_1 = arith.constant 0 : i32
    return %c0_i32, %c0_i32_0 : i32, i32
  }
  func.func @transform_4(%arg0: i32) -> (i32, i32, i32) {
    %c0_i32 = arith.constant 0 : i32
    %c0_i32_0 = arith.constant 0 : i32
    %c0_i32_1 = arith.constant 0 : i32
    return %arg0, %c0_i32, %c0_i32_0 : i32, i32, i32
  }
  func.func @transform_5(%arg0: i32) -> (i32, i32, i32) {
    %c0_i32 = arith.constant 0 : i32
    %c0_i32_0 = arith.constant 0 : i32
    %c0_i32_1 = arith.constant 0 : i32
    return %arg0, %c0_i32, %c0_i32_0 : i32, i32, i32
  }
  func.func @transform_6(%arg0: i32) -> (i32, i32, i32) {
    %c0_i32 = arith.constant 0 : i32
    %c0_i32_0 = arith.constant 0 : i32
    %c0_i32_1 = arith.constant 0 : i32
    return %arg0, %c0_i32, %c0_i32_0 : i32, i32, i32
  }
}

</mosaic_0001>

<bundles_post_ra>
// kernel: convlstm_cell_forward.1
= control target key start
LH: loop header
LB: loop body
LE: loop exit
PB: predicated region body
PF: predicated region fallthrough
CT: control target
= control target key end

     0   :  { %s2895_s21 = smov 0   ;;  %s3636_s0 = inlined_call_operand.vmem [shape: bf16[2,48,290], index: 0, kind: input, shape index: {}]   ;;  %s3637_s1 = inlined_call_operand.vmem [shape: bf16[128,432], index: 1, kind: input, shape index: {}]   ;;  %s3638_s2 = inlined_call_operand.vmem [shape: f32[128,1], index: 2, kind: input, shape index: {}]   ;;  %s3639_s3 = inlined_call_operand.vmem [shape: bf16[3,256], index: 3, kind: input, shape index: {}]   ;;  %s3640_s4 = inlined_call_operand.vmem [shape: f32[2,32,256], index: 4, kind: input, shape index: {}]   ;;  %s3641_s5 = inlined_call_operand.vmem [shape: f32[2,32,256], index: 5, kind: output, shape index: {0}]   ;;  %s3642_s6 = inlined_call_operand.vmem [shape: f32[2,32,256], index: 6, kind: output, shape index: {1}]  }
   0x1 LB: > { %s2490_s22 = sadd.s32 4294967295, %s2844_s21   ;;  %p2494_p0 = scmp.ge.s32.totalorder %s2844_s21, 1  ;;  %s2844_s21 = sphi %s2895_s21, %s17_s21  }
   0x2   : > { %p225_p1 = scmp.lt.s32.totalorder %s2844_s21, 3 }
   0x4   : > { %p226_p2 = pnand %p2494_p0, %p225_p1 }
   0x5   : > { %p265_p3 = scmp.lt.s32.totalorder (!%p226_p2), %s2490_s22, 1  ;;  %s2846_s7 = smov (!%p226_p2), 127  }
   0x6   : > { %229 = sbr.rel (%p226_p2) target bundleno = 677 (0x2a5), region = 40  ;;  %s2847_s8 = smov (!%p226_p2), 2  }
   0x7   : > { %s2848_s9 = smov (!%p226_p2), 32   ;;  %s2849_s10 = smov (!%p226_p2), 18  }
   0x8   : > { %s2850_s11 = smov (!%p226_p2), 16   ;;  %s2851_s12 = smov (!%p226_p2), 34  }
   0x9   : > { %s2852_s13 = smov (!%p226_p2), 95   ;;  %s2853_s14 = smov (!%p226_p2), 111  }
   0xa   : > { %s2854_s15 = smov (!%p226_p2), 126   ;;  %s2855_s16 = smov (!%p226_p2), 110  }
   0xb   : > { %v305_v0 = vlaneseq  ;;  %v2504_v1 = vld.sshfl [vmem:[%s3639_s3] sm:$0x22 pattern:$0x76325410]  ;;  %s3644_s22 = smov (!%p265_p3, %s2490_s22), 1  ;;  %vm464_vm0 = vcmask 15360  }
   0xc   : > { %v441_v2 = vcombine.high %v2504_v1, %v2504_v1  ;;  %v2510_v3 = vld.sshfl [vmem:[%s3639_s3] sm:$0x11 pattern:$0x76325410]  ;;  %v443_v5 = vpack.i.b16 %v2504_v1, %v2504_v1  ;;  %s2637_s27 = smul.u32 72, %s3644_s22  ;;  %vm815_vm1 = vcmask 146432  }
   0xd   : > { %v306_v4 = vshrl.u32 %v305_v0, 7  ;;  %v925_v6 = vcombine.high %v2510_v3, %v2510_v3  ;;  %v927_v7 = vpack.i.b16 %v2510_v3, %v2510_v3  ;;  %vm948_vm2 = vcmask 261120   ;;  %s2856_s17 = smov 96   ;;  %s2857_s18 = smov 112  }
   0xe   : > { %v450_v8 = vpack.i.b16 %v441_v2, %v441_v2  ;;  %s2915_s30 = scalar_lea.vmem %s3636_s0, %s2637_s27  ;;  %vm394_vm3 = vcmask 1043456   ;;  %vm1098_vm4 = vcmask 777216   ;;  %vm597_vm5 = vcmask 130048   ;;  %s2858_s19 = smov 94  }
   0xf   : > { %v447_v9 = vsub.s32 1, %v306_v4  ;;  %v307_v10 = vsub.s32 0, %v306_v4  ;;  %v934_v11 = vpack.i.b16 %v925_v6, %v925_v6  ;;  %v2918_v17 = vld [vmem:[%s2915_s30 + $0x30] sm:$0xff]  ;;  %v2927_v19 = vld [vmem:[%s2915_s30 + $0x3c] sm:$0xff]  ;;  %v343_v20 = vld [vmem:[%s2915_s30 + $0x38] sm:$0xf] }
  0x10   : > { %374 = vrot.lane.b32.xlu1 %v2918_v17, %s2846_s7  ;;  %v345_v21 = vld [vmem:[%s2915_s30 + $0x44] sm:$0xf]  ;;  %v2935_v22 = vld [vmem:[%s2915_s30 + $0x18] sm:$0xff]  ;;  %v339_v24 = vld [vmem:[%s2915_s30 + $0x20] sm:$0xf]  ;;  %vm747_vm6 = vcmask 908288  }
  0x11   : > { %v448_v12 = vrot.slane %v443_v5, %v447_v9  ;;  %v455_v13 = vrot.slane %v450_v8, %v447_v9  ;;  %v932_v14 = vrot.slane %v927_v7, %v307_v10  ;;  %v939_v15 = vrot.slane %v934_v11, %v307_v10  ;;  %v2940_v23 = vld [vmem:[%s2915_s30 + $0x24] sm:$0xff]  ;;  %v341_v26 = vld [vmem:[%s2915_s30 + $0x2c] sm:$0xf]  ;;  %v337_v29 = vld [vmem:[%s2915_s30 + $0x14] sm:$0xf] }
  0x12   : > { %v2948_v25 = vld [vmem:[%s2915_s30] sm:$0xff]  ;;  %v2955_v27 = vld [vmem:[%s2915_s30 + $0xc] sm:$0xff]  ;;  %v335_v28 = vld [vmem:[%s2915_s30 + $0x8] sm:$0xf]  ;;  %vm1166_vm7 = vcmask 277504   ;;  %vm1859_vm8 = vcmask 392192  }
  0x13   : > { %v2505_v16 = vcombine.low %v448_v12, %v455_v13  ;;  %v2922_v18 = vcombine.low %v932_v14, %v939_v15  ;;  %v1046_v30 = vld [vmem:[%s2915_s30 + $0x38] sm:$0xf]  ;;  %v1048_v31 = vld [vmem:[%s2915_s30 + $0x44] sm:$0xf]  ;;  %v1042_v32 = vld [vmem:[%s2915_s30 + $0x20] sm:$0xf] }
  0x14   : > { %v1044_v33 = vld [vmem:[%s2915_s30 + $0x2c] sm:$0xf]  ;;  %v1038_v34 = vld [vmem:[%s2915_s30 + $0x8] sm:$0xf]  ;;  %v1040_v35 = vld [vmem:[%s2915_s30 + $0x14] sm:$0xf] }
  0x15   : > { %461 = vrot.lane.b32.xlu0 %v2505_v16, %s2847_s8  ;;  %945 = vrot.lane.b32.xlu1 %v2922_v18, %s2848_s9  ;;  %v695_v36 = vld [vmem:[%s2915_s30 + $0x38] sm:$0xf]  ;;  %v697_v37 = vld [vmem:[%s2915_s30 + $0x44] sm:$0xf]  ;;  %vm529_vm9 = vcmask 1031168   ;;  %vm396_vm10 = vcmask 1039360  }
  0x16   : > { %v691_v38 = vld [vmem:[%s2915_s30 + $0x20] sm:$0xf]  ;;  %v693_v39 = vld [vmem:[%s2915_s30 + $0x2c] sm:$0xf]  ;;  %v687_v40 = vld [vmem:[%s2915_s30 + $0x8] sm:$0xf] }
  0x17   : > { %v689_v41 = vld [vmem:[%s2915_s30 + $0x14] sm:$0xf]  ;;  %v425_v44 = vld [vmem:[%s2915_s30 + $0x20] sm:$0xf]  ;;  %v427_v51 = vld [vmem:[%s2915_s30 + $0x2c] sm:$0xf] }
  0x18   : > { %v421_v56 = vld [vmem:[%s2915_s30 + $0x8] sm:$0xf]  ;;  %v423_v61 = vld [vmem:[%s2915_s30 + $0x14] sm:$0xf]  ;;  %v913_v11 = vld [vmem:[%s2915_s30 + $0x38] sm:$0xf] }
  0x19   : > { %812 = vrot.lane.b32.xlu0 %v2505_v16, %s2849_s10  ;;  %594 = vrot.lane.b32.xlu1 %v2922_v18, %s2850_s11  ;;  %v772_v63 = vld [vmem:[%s2915_s30 + $0x8] sm:$0xf]  ;;  %v774_v8 = vld [vmem:[%s2915_s30 + $0x14] sm:$0xf]  ;;  %vm1013_vm11 = vcmask 785408   ;;  %vm880_vm12 = vcmask 900096  }
  0x1a   : > { %vm662_vm13 = vcmask 916480   ;;  %vm1231_vm14 = vcmask 769024  }
  0x1d   : > { %1163 = vrot.lane.b32.xlu0 %v2505_v16, %s2851_s12  ;;  %378 = vrot.lane.b32.xlu1 %v2927_v19, %s2846_s7 }
  0x21   : > { %376 = vrot.lane.b32.xlu0 %v343_v20, %s2846_s7  ;;  %366 = vrot.lane.b32.xlu1 %v2935_v22, %s2846_s7 }
  0x25   : > { %380 = vrot.lane.b32.xlu0 %v345_v21, %s2846_s7  ;;  %370 = vrot.lane.b32.xlu1 %v2940_v23, %s2846_s7 }
  0x29   : > { %368 = vrot.lane.b32.xlu0 %v339_v24, %s2846_s7  ;;  %358 = vrot.lane.b32.xlu1 %v2948_v25, %s2846_s7 }
  0x2d   : > { %372 = vrot.lane.b32.xlu0 %v341_v26, %s2846_s7  ;;  %362 = vrot.lane.b32.xlu1 %v2955_v27, %s2846_s7  ;;  %v915_v26 = vld [vmem:[%s2915_s30 + $0x44] sm:$0xf] }
  0x31   : > { %360 = vrot.lane.b32.xlu0 %v335_v28, %s2846_s7  ;;  %1077 = vrot.lane.b32.xlu1 %v2918_v17, %s2852_s13 }
  0x35   : > { %364 = vrot.lane.b32.xlu0 %v337_v29, %s2846_s7  ;;  %1081 = vrot.lane.b32.xlu1 %v2927_v19, %s2852_s13 }
  0x39   : > { %1079 = vrot.lane.b32.xlu0 %v1046_v30, %s2852_s13  ;;  %1069 = vrot.lane.b32.xlu1 %v2935_v22, %s2852_s13 }
  0x3d   : > { %1083 = vrot.lane.b32.xlu0 %v1048_v31, %s2852_s13  ;;  %1073 = vrot.lane.b32.xlu1 %v2940_v23, %s2852_s13 }
  0x41   : > { %1071 = vrot.lane.b32.xlu0 %v1042_v32, %s2852_s13  ;;  %1061 = vrot.lane.b32.xlu1 %v2948_v25, %s2852_s13  ;;  %v909_v32 = vld [vmem:[%s2915_s30 + $0x20] sm:$0xf] }
  0x45   : > { %1075 = vrot.lane.b32.xlu0 %v1044_v33, %s2852_s13  ;;  %1065 = vrot.lane.b32.xlu1 %v2955_v27, %s2852_s13 }
  0x49   : > { %1063 = vrot.lane.b32.xlu0 %v1038_v34, %s2852_s13  ;;  %726 = vrot.lane.b32.xlu1 %v2918_v17, %s2853_s14 }
  0x4d   : > { %1067 = vrot.lane.b32.xlu0 %v1040_v35, %s2852_s13  ;;  %730 = vrot.lane.b32.xlu1 %v2927_v19, %s2853_s14 }
  0x51   : > { %728 = vrot.lane.b32.xlu0 %v695_v36, %s2853_s14  ;;  %718 = vrot.lane.b32.xlu1 %v2935_v22, %s2853_s14 }
  0x55   : > { %732 = vrot.lane.b32.xlu0 %v697_v37, %s2853_s14  ;;  %722 = vrot.lane.b32.xlu1 %v2940_v23, %s2853_s14 }
  0x59   : > { %720 = vrot.lane.b32.xlu0 %v691_v38, %s2853_s14  ;;  %710 = vrot.lane.b32.xlu1 %v2948_v25, %s2853_s14  ;;  %v911_v38 = vld [vmem:[%s2915_s30 + $0x2c] sm:$0xf] }
  0x5d   : > { %724 = vrot.lane.b32.xlu0 %v693_v39, %s2853_s14  ;;  %714 = vrot.lane.b32.xlu1 %v2955_v27, %s2853_s14 }
  0x61   : > { %712 = vrot.lane.b32.xlu0 %v687_v40, %s2853_s14 }
  0x65   : > { %716 = vrot.lane.b32.xlu0 %v689_v41, %s2853_s14 }
  0x82   : > { %v2987_v42 = vpop.permute.xlu1 %374 }
  0x87   : > { %v462_v43 = vpop.permute.xlu0 %461  ;;  %v946_v48 = vpop.permute.xlu1 %945 }
  0x88   : > { %v2990_v45 = vrot.slane %v462_v43, 4  ;;  %v3044_v10 = vrot.slane %v946_v48, 4 }
  0x8a   : > { %v2993_v46 = vsel %vm464_vm0, %v2990_v45, %v462_v43  ;;  %v473_v47 = vmul.bf16 %v2990_v45, %v425_v44  ;;  %v475_v52 = vmul.bf16 %v2990_v45, %v427_v51  ;;  %v469_v57 = vmul.bf16 %v2990_v45, %v421_v56 }
  0x8b   : > { %v813_v49 = vpop.permute.xlu0 %812  ;;  %v472_v50 = vmul.bf16 %v2993_v46, %v2935_v22  ;;  %v3002_v53 = vpop.permute.xlu1 %594  ;;  %v474_v55 = vmul.bf16 %v2993_v46, %v2940_v23  ;;  %v468_v60 = vmul.bf16 %v2993_v46, %v2948_v25  ;;  %v471_v0 = vmul.bf16 %v2990_v45, %v423_v61 }
  0x8c   : > { %502 = vrot.lane.b32.xlu0 %v473_v47, %s2854_s15  ;;  %v3019_v62 = vrot.slane %v813_v49, 4  ;;  %v470_v3 = vmul.bf16 %v2993_v46, %v2955_v27  ;;  %v3057_v16 = vsel %vm948_vm2, %v3044_v10, %v946_v48  ;;  %v961_v20 = vmul.bf16 %v3044_v10, %v913_v11 }
  0x8d   : > { %500 = vrot.lane.b32.xlu1 %v472_v50, %s2854_s15  ;;  %v960_v24 = vmul.bf16 %v3057_v16, %v2918_v17  ;;  %v963_v29 = vmul.bf16 %v3044_v10, %v915_v26  ;;  %v962_v31 = vmul.bf16 %v3057_v16, %v2927_v19  ;;  %v957_v34 = vmul.bf16 %v3044_v10, %v909_v32  ;;  %v780_v26 = vld [vmem:[%s2915_s30 + $0x38] sm:$0xf] }
  0x8e   : > { %v3032_v4 = vsel %vm815_vm1, %v3019_v62, %v813_v49  ;;  %v820_v5 = vmul.bf16 %v3019_v62, %v772_v63  ;;  %v822_v12 = vmul.bf16 %v3019_v62, %v774_v8  ;;  %v956_v37 = vmul.bf16 %v3057_v16, %v2935_v22  ;;  %v905_v49 = vld [vmem:[%s2915_s30 + $0x8] sm:$0xf]  ;;  %v907_v63 = vld [vmem:[%s2915_s30 + $0x14] sm:$0xf] }
  0x8f   : > { %v3004_v54 = vpop.permute.xlu0 %1163  ;;  %v3012_v58 = vpop.permute.xlu1 %378  ;;  %v819_v7 = vmul.bf16 %v3032_v4, %v2948_v25  ;;  %v821_v14 = vmul.bf16 %v3032_v4, %v2955_v27  ;;  %v959_v41 = vmul.bf16 %v3044_v10, %v911_v38  ;;  %v958_v48 = vmul.bf16 %v3057_v16, %v2940_v23 }
  0x90   : > { %506 = vrot.lane.b32.xlu0 %v475_v52, %s2854_s15  ;;  %v952_v61 = vmul.bf16 %v3057_v16, %v2948_v25  ;;  %v955_v11 = vmul.bf16 %v3044_v10, %v907_v63 }
  0x91   : > { %504 = vrot.lane.b32.xlu1 %v474_v55, %s2854_s15  ;;  %v953_v55 = vmul.bf16 %v3044_v10, %v905_v49  ;;  %v828_v10 = vmul.bf16 %v3019_v62, %v780_v26 }
  0x93   : > { %v3014_v59 = vpop.permute.xlu0 %376  ;;  %v3025_v1 = vpop.permute.xlu1 %366 }
  0x94   : > { %494 = vrot.lane.b32.xlu0 %v469_v57, %s2854_s15 }
  0x95   : > { %492 = vrot.lane.b32.xlu1 %v468_v60, %s2854_s15 }
  0x97   : > { %v3027_v2 = vpop.permute.xlu0 %380  ;;  %v3037_v6 = vpop.permute.xlu1 %370 }
  0x98   : > { %498 = vrot.lane.b32.xlu0 %v471_v0, %s2854_s15 }
  0x99   : > { %496 = vrot.lane.b32.xlu1 %v470_v3, %s2854_s15 }
  0x9b   : > { %v3042_v9 = vpop.permute.xlu0 %368  ;;  %v3050_v13 = vpop.permute.xlu1 %358 }
  0x9c   : > { %845 = vrot.lane.b32.xlu0 %v820_v5, %s2855_s16 }
  0x9d   : > { %843 = vrot.lane.b32.xlu1 %v819_v7, %s2855_s16 }
  0x9f   : > { %v3054_v15 = vpop.permute.xlu0 %372  ;;  %v3062_v21 = vpop.permute.xlu1 %362 }
  0xa0   : > { %849 = vrot.lane.b32.xlu0 %v822_v12, %s2855_s16 }
  0xa1   : > { %847 = vrot.lane.b32.xlu1 %v821_v14, %s2855_s16 }
  0xa3   : > { %v3067_v28 = vpop.permute.xlu0 %360  ;;  %v1078_v30 = vpop.permute.xlu1 %1077 }
  0xa4   : > { %994 = vrot.lane.b32.xlu0 %v961_v20, %s2856_s17  ;;  %v1093_v35 = vrot.slane %v1078_v30, 4 }
  0xa5   : > { %992 = vrot.lane.b32.xlu1 %v960_v24, %s2856_s17  ;;  %v954_v24 = vmul.bf16 %v3057_v16, %v2955_v27  ;;  %v782_v16 = vld [vmem:[%s2915_s30 + $0x44] sm:$0xf] }
  0xa7   : > { %v3075_v33 = vpop.permute.xlu0 %364  ;;  %v1082_v36 = vpop.permute.xlu1 %1081 }
  0xa8   : > { %998 = vrot.lane.b32.xlu0 %v963_v29, %s2856_s17  ;;  %v1095_v43 = vrot.slane %v1082_v36, 4 }
  0xa9   : > { %996 = vrot.lane.b32.xlu1 %v962_v31, %s2856_s17 }
  0xab   : > { %v1080_v39 = vpop.permute.xlu0 %1079  ;;  %v1070_v44 = vpop.permute.xlu1 %1069 }
  0xac   : > { %986 = vrot.lane.b32.xlu0 %v957_v34, %s2856_s17  ;;  %v1094_v40 = vrot.slane %v1080_v39, 4  ;;  %v1089_v56 = vrot.slane %v1070_v44, 4  ;;  %v3116_v39 = vrot.slane %v3002_v53, 4 }
  0xad   : > { %984 = vrot.lane.b32.xlu1 %v956_v37, %s2856_s17 }
  0xae   : > { %v1106_v47 = vsel %vm394_vm3, %v1093_v35, %v1094_v40 }
  0xaf   : > { %v1084_v50 = vpop.permute.xlu0 %1083  ;;  %v1107_v52 = vsel %vm1098_vm4, %v1078_v30, %v1106_v47  ;;  %v1074_v60 = vpop.permute.xlu1 %1073 }
  0xb0   : > { %990 = vrot.lane.b32.xlu0 %v959_v41, %s2856_s17  ;;  %v1096_v51 = vrot.slane %v1084_v50, 4  ;;  %v1091_v14 = vrot.slane %v1074_v60, 4  ;;  %v829_v50 = vmul.bf16 %v3032_v4, %v2927_v19 }
  0xb1   : > { %988 = vrot.lane.b32.xlu1 %v958_v48, %s2856_s17 }
  0xb2   : > { %v1108_v57 = vsel %vm394_vm3, %v1095_v43, %v1096_v51  ;;  %v562_v51 = vld [vmem:[%s2915_s30 + $0x38] sm:$0xf] }
  0xb3   : > { %v1072_v0 = vpop.permute.xlu0 %1071  ;;  %v1109_v3 = vsel %vm1098_vm4, %v1082_v36, %v1108_v57  ;;  %v1062_v20 = vpop.permute.xlu1 %1061  ;;  %v827_v36 = vmul.bf16 %v3032_v4, %v2918_v17 }
  0xb4   : > { %978 = vrot.lane.b32.xlu0 %v953_v55, %s2856_s17  ;;  %v1090_v5 = vrot.slane %v1072_v0, 4  ;;  %v2593_v7 = vcombine.high %v1107_v52, %v1109_v3  ;;  %v2592_v8 = vcombine.low %v1107_v52, %v1109_v3  ;;  %v1085_v34 = vrot.slane %v1062_v20, 4  ;;  %v564_v3 = vld [vmem:[%s2915_s30 + $0x44] sm:$0xf] }
  0xb5   : > { %976 = vrot.lane.b32.xlu1 %v952_v61, %s2856_s17  ;;  %v3127_v55 = vsel %vm597_vm5, %v3116_v39, %v3002_v53 }
  0xb6   : > { %v1102_v12 = vsel %vm394_vm3, %v1089_v56, %v1090_v5  ;;  %1997 = vmatprep.subr.bf16.mxu1 %v2593_v7  ;;  %v609_v0 = vmul.bf16 %v3127_v55, %v2918_v17  ;;  %v611_v26 = vmul.bf16 %v3127_v55, %v2927_v19 }
  0xb7   : > { %v1076_v29 = vpop.permute.xlu0 %1075  ;;  %1998 = vmatpush1.bf16.msra.mxu1 %v2592_v8  ;;  %v1103_v31 = vsel %vm1098_vm4, %v1070_v44, %v1102_v12  ;;  %v1066_v35 = vpop.permute.xlu1 %1065  ;;  %v830_v44 = vmul.bf16 %v3019_v62, %v782_v16 }
  0xb8   : > { %982 = vrot.lane.b32.xlu0 %v955_v11, %s2856_s17  ;;  %v1092_v30 = vrot.slane %v1076_v29, 4  ;;  %v1087_v48 = vrot.slane %v1066_v35, 4  ;;  %v776_v29 = vld [vmem:[%s2915_s30 + $0x20] sm:$0xf] }
  0xb9   : > { %980 = vrot.lane.b32.xlu1 %v954_v24, %s2856_s17 }
  0xba   : > { %v1104_v32 = vsel %vm394_vm3, %v1091_v14, %v1092_v30  ;;  %v612_v14 = vmul.bf16 %v3116_v39, %v564_v3  ;;  %v556_v3 = vld [vmem:[%s2915_s30 + $0x14] sm:$0xf] }
  0xbb   : > { %v1105_v37 = vsel %vm1098_vm4, %v1074_v60, %v1104_v32  ;;  %v1064_v38 = vpop.permute.xlu0 %1063  ;;  %v727_v49 = vpop.permute.xlu1 %726  ;;  %v610_v60 = vmul.bf16 %v3116_v39, %v562_v51  ;;  %v824_v32 = vmul.bf16 %v3019_v62, %v776_v29  ;;  %v429_v29 = vld [vmem:[%s2915_s30 + $0x38] sm:$0xf] }
  0xbc   : > { %861 = vrot.lane.b32.xlu0 %v828_v10, %s2855_s16  ;;  %v2590_v40 = vcombine.low %v1103_v31, %v1105_v37  ;;  %v2591_v41 = vcombine.high %v1103_v31, %v1105_v37  ;;  %v1086_v43 = vrot.slane %v1064_v38, 4  ;;  %v742_v63 = vrot.slane %v727_v49, 4 }
  0xbd   : > { %859 = vrot.lane.b32.xlu1 %v827_v36, %s2855_s16  ;;  %v778_v36 = vld [vmem:[%s2915_s30 + $0x2c] sm:$0xf] }
  0xbe   : > { %v1097_v47 = vsel %vm394_vm3, %v1085_v34, %v1086_v43  ;;  %1999 = vmatprep.subr.bf16.mxu1 %v2591_v41  ;;  %v825_v41 = vmul.bf16 %v3032_v4, %v2940_v23  ;;  %v558_v43 = vld [vmem:[%s2915_s30 + $0x20] sm:$0xf] }
  0xbf   : > { %v1068_v52 = vpop.permute.xlu0 %1067  ;;  %2000 = vmatpush1.bf16.msra.mxu1 %v2590_v40  ;;  %v1099_v57 = vsel %vm1098_vm4, %v1062_v20, %v1097_v47  ;;  %v731_v7 = vpop.permute.xlu1 %730  ;;  %v826_v40 = vmul.bf16 %v3019_v62, %v778_v36  ;;  %v605_v47 = vmul.bf16 %v3127_v55, %v2935_v22 }
  0xc0   : > { %865 = vrot.lane.b32.xlu0 %v830_v44, %s2855_s16  ;;  %v1088_v56 = vrot.slane %v1068_v52, 4  ;;  %v744_v24 = vrot.slane %v731_v7, 4  ;;  %v606_v44 = vmul.bf16 %v3116_v39, %v558_v43 }
  0xc1   : > { %863 = vrot.lane.b32.xlu1 %v829_v50, %s2855_s16  ;;  %v1131_v50 = vld [vmem:[%s2915_s30 + $0x38] sm:$0xf] }
  0xc2   : > { %v1100_v61 = vsel %vm394_vm3, %v1087_v48, %v1088_v56  ;;  %v560_v48 = vld [vmem:[%s2915_s30 + $0x2c] sm:$0xf] }
  0xc3   : > { %v1101_v53 = vsel %vm1098_vm4, %v1066_v35, %v1100_v61  ;;  %v729_v5 = vpop.permute.xlu0 %728  ;;  %v823_v35 = vmul.bf16 %v3032_v4, %v2935_v22  ;;  %v608_v62 = vmul.bf16 %v3116_v39, %v560_v48  ;;  %v607_v4 = vmul.bf16 %v3127_v55, %v2940_v23  ;;  %v554_v61 = vld [vmem:[%s2915_s30 + $0x8] sm:$0xf]  ;;  %v2669_v48 = vld [vmem:[%s3637_s1 + $0xc] ss:$16 sps:$4 sm:$0xff]  }
  0xc4   : > { %643 = vrot.lane.b32.xlu0 %v610_v60, %s2857_s18  ;;  %v2588_v8 = vcombine.low %v1099_v57, %v1101_v53  ;;  %v2589_v11 = vcombine.high %v1099_v57, %v1101_v53  ;;  %v743_v12 = vrot.slane %v729_v5, 4  ;;  %v1133_v57 = vld [vmem:[%s2915_s30 + $0x44] sm:$0xf]  ;;  %v604_v53 = vmul.bf16 %v3116_v39, %v556_v3  ;;  %2600 = vmatprep.mubr.msk.bf16.mxu1 %vm1859_vm8, %v2669_v48 }
  0xc5   : > { %641 = vrot.lane.b32.xlu1 %v609_v0, %s2857_s18  ;;  %v601_v0 = vmul.bf16 %v3127_v55, %v2948_v25  ;;  %v603_v5 = vmul.bf16 %v3127_v55, %v2955_v27  ;;  %v382_v48 = vrot.slane %v3050_v13, 4 }
  0xc6   : > { %v755_v20 = vsel %vm394_vm3, %v742_v63, %v743_v12  ;;  %2001 = vmatprep.subr.bf16.mxu1 %v2589_v11  ;;  %v602_v63 = vmul.bf16 %v3116_v39, %v554_v61  ;;  %v3214_v11 = vpop.permute.xlu1 %718  ;;  %v1129_v39 = vld [vmem:[%s2915_s30 + $0x2c] sm:$0xf] }
  0xc7   : > { %v3146_v30 = vsel %vm747_vm6, %v727_v49, %v755_v20  ;;  %2002 = vmatpush1.bf16.msra.mxu1 %v2588_v8  ;;  %v733_v31 = vpop.permute.xlu0 %732  ;;  %v3175_v49 = vrot.slane %v3004_v54, 4 }
  0xc8   : > { %647 = vrot.lane.b32.xlu0 %v612_v14, %s2857_s18  ;;  %v745_v10 = vrot.slane %v733_v31, 4  ;;  %v477_v31 = vmul.bf16 %v2990_v45, %v429_v29 }
  0xc9   : > { %645 = vrot.lane.b32.xlu1 %v611_v26, %s2857_s18  ;;  %v3185_v51 = vsel %vm1166_vm7, %v3175_v49, %v3004_v54  ;;  %v1179_v52 = vmul.bf16 %v3175_v49, %v1131_v50  ;;  %v1181_v54 = vmul.bf16 %v3175_v49, %v1133_v57  ;;  %v1177_v20 = vmul.bf16 %v3175_v49, %v1129_v39 }
  0xca   : > { %v757_v34 = vsel %vm394_vm3, %v744_v24, %v745_v10  ;;  %v1178_v56 = vmul.bf16 %v3185_v51, %v2918_v17  ;;  %v1180_v60 = vmul.bf16 %v3185_v51, %v2927_v19  ;;  %v1174_v14 = vmul.bf16 %v3185_v51, %v2935_v22  ;;  %v3226_v24 = vpop.permute.xlu1 %722 }
  0xcb   : > { %v3156_v16 = vsel %vm747_vm6, %v731_v7, %v757_v34  ;;  %v1127_v7 = vld [vmem:[%s2915_s30 + $0x20] sm:$0xf]  ;;  %v3212_v8 = vpop.permute.xlu0 %720  ;;  %v1176_v26 = vmul.bf16 %v3185_v51, %v2940_v23  ;;  %v476_v10 = vmul.bf16 %v2993_v46, %v2918_v17  ;;  %v2664_v17 = vld [vmem:[%s3637_s1 + $0x4] ss:$16 sps:$4 sm:$0xff]  }
  0xcc   : > { %853 = vrot.lane.b32.xlu0 %v824_v32, %s2855_s16  ;;  %v2574_v37 = vcombine.low %v3146_v30, %v3156_v16  ;;  %v2575_v38 = vcombine.high %v3146_v30, %v3156_v16  ;;  %v1175_v12 = vmul.bf16 %v3175_v49, %v1127_v7  ;;  %v431_v32 = vld [vmem:[%s2915_s30 + $0x44] sm:$0xf]  ;;  %1916 = vmatprep.mubr.bf16.mxu0 %v2664_v17  ;;  %v2859_v30 = vmov 0   ;;  %v1342_v16 = vld [vmem:[%s3638_s2 + $0x8] sm:$0xff] }
  0xcd   : > { %851 = vrot.lane.b32.xlu1 %v823_v35, %s2855_s16  ;;  %v479_v36 = vmul.bf16 %v2990_v45, %v431_v32  ;;  %v1170_v45 = vmul.bf16 %v3185_v51, %v2948_v25  ;;  %2661 = vset.pattern.permute.xlu0 %v2859_v30 }
  0xce   : > { %v3240_v35 = vpop.permute.xlu1 %710  ;;  %2660 = vset.pattern.permute.xlu1 %v2859_v30 }
  0xcf   : > { %v3223_v55 = vpop.permute.xlu0 %724 }
  0xd0   : > { %857 = vrot.lane.b32.xlu0 %v826_v40, %s2855_s16  ;;  %v478_v40 = vmul.bf16 %v2993_v46, %v2927_v19  ;;  %v1125_v46 = vld [vmem:[%s2915_s30 + $0x14] sm:$0xf] }
  0xd1   : > { %855 = vrot.lane.b32.xlu1 %v825_v41, %s2855_s16  ;;  %v1123_v41 = vld [vmem:[%s2915_s30 + $0x8] sm:$0xf] }
  0xd3   : > { %v3237_v34 = vpop.permute.xlu0 %712 }
  0xd4   : > { %635 = vrot.lane.b32.xlu0 %v606_v44, %s2857_s18  ;;  %v1171_v44 = vmul.bf16 %v3175_v49, %v1123_v41 }
  0xd5   : > { %633 = vrot.lane.b32.xlu1 %v605_v47, %s2857_s18  ;;  %v3255_v47 = vpop.permute.xlu1 %714 }
  0xd7   : > { %v3252_v43 = vpop.permute.xlu0 %716 }
  0xd8   : > { %639 = vrot.lane.b32.xlu0 %v608_v62, %s2857_s18 }
  0xd9   : > { %637 = vrot.lane.b32.xlu1 %v607_v4, %s2857_s18  ;;  %v1173_v4 = vmul.bf16 %v3175_v49, %v1125_v46  ;;  %v392_v49 = vrot.slane %v3012_v58, 4 }
  0xdc   : > { %1212 = vrot.lane.b32.xlu0 %v1179_v52, %s2858_s19  ;;  %v1172_v52 = vmul.bf16 %v3185_v51, %v2955_v27 }
  0xdd   : > { %1210 = vrot.lane.b32.xlu1 %v1178_v56, %s2858_s19 }
  0xe0   : > { %1216 = vrot.lane.b32.xlu0 %v1181_v54, %s2858_s19 }
  0xe1   : > { %1214 = vrot.lane.b32.xlu1 %v1180_v60, %s2858_s19 }
  0xe4   : > { %627 = vrot.lane.b32.xlu0 %v602_v63, %s2857_s18 }
  0xe5   : > { %625 = vrot.lane.b32.xlu1 %v601_v0, %s2857_s18  ;;  %v393_v0 = vrot.slane %v3027_v2, 4 }
  0xe7   : > { %v406_v2 = vsel %vm394_vm3, %v392_v49, %v393_v0 }
  0xe8   : > { %631 = vrot.lane.b32.xlu0 %v604_v53, %s2857_s18  ;;  %v390_v53 = vrot.slane %v2987_v42, 4  ;;  %v407_v46 = vsel %vm396_vm10, %v3012_v58, %v406_v2 }
  0xe9   : > { %629 = vrot.lane.b32.xlu1 %v603_v5, %s2857_s18  ;;  %v391_v5 = vrot.slane %v3014_v59, 4 }
  0xeb   : > { %v404_v59 = vsel %vm394_vm3, %v390_v53, %v391_v5  ;;  %v290_v53 = vld [vmem:[%s2915_s30 + $0x30] sm:$0xff] }
  0xec   : > { %1204 = vrot.lane.b32.xlu0 %v1175_v12, %s2858_s19 }
  0xed   : > { %1202 = vrot.lane.b32.xlu1 %v1174_v14, %s2858_s19 }
  0xf0   : > { %1208 = vrot.lane.b32.xlu0 %v1177_v20, %s2858_s19 }
  0xf1   : > { %1206 = vrot.lane.b32.xlu1 %v1176_v26, %s2858_s19 }
  0xf4   : > { %510 = vrot.lane.b32.xlu0 %v477_v31, %s2854_s15  ;;  %v387_v31 = vrot.slane %v3042_v9, 4 }
  0xf5   : > { %508 = vrot.lane.b32.xlu1 %v476_v10, %s2854_s15  ;;  %v386_v10 = vrot.slane %v3025_v1, 4 }
  0xf7   : > { %v400_v9 = vsel %vm394_vm3, %v386_v10, %v387_v31 }
  0xf8   : > { %514 = vrot.lane.b32.xlu0 %v479_v36, %s2854_s15  ;;  %v389_v36 = vrot.slane %v3054_v15, 4  ;;  %v405_v15 = vsel %vm396_vm10, %v2987_v42, %v404_v59  ;;  %v401_v0 = vsel %vm396_vm10, %v3025_v1, %v400_v9  ;;  %v286_v59 = vld [vmem:[%s2915_s30] sm:$0xff]  ;;  %s3581_s30 = sshll.u32 %s3644_s22, 6 }
  0xf9   : > { %512 = vrot.lane.b32.xlu1 %v478_v40, %s2854_s15  ;;  %v388_v40 = vrot.slane %v3037_v6, 4  ;;  %v2557_v42 = vcombine.high %v405_v15, %v407_v46  ;;  %s3587_s9 = scalar_lea.vmem %s3640_s4, %s3581_s30  ;;  %s3597_s11 = scalar_lea.vmem %s3642_s6, %s3581_s30 }
  0xfa   : > { %s3622_s14 = scalar_lea.vmem %s3641_s5, %s3581_s30 }
  0xfc   : > { %1196 = vrot.lane.b32.xlu0 %v1171_v44, %s2858_s19 }
  0xfd   : > { %1194 = vrot.lane.b32.xlu1 %v1170_v45, %s2858_s19 }
  0xfe   : > { %v503_v62 = vpop.permute.xlu0 %502 }
  0xff   : > { %v501_v50 = vpop.permute.xlu1 %500  ;;  %v521_v25 = vrot.slane %v503_v62, 4 }
 0x100   : > { %v520_v56 = vrot.slane %v501_v50, 4  ;;  %1200 = vrot.lane.b32.xlu0 %v1173_v4, %s2858_s19 }
 0x101   : > { %1198 = vrot.lane.b32.xlu1 %v1172_v52, %s2858_s19  ;;  %v384_v52 = vrot.slane %v3062_v21, 4 }
 0x102   : > { %v507_v57 = vpop.permute.xlu0 %506  ;;  %v533_v63 = vsel %vm394_vm3, %v520_v56, %v521_v25 }
 0x103   : > { %v523_v54 = vrot.slane %v507_v57, 4  ;;  %v505_v60 = vpop.permute.xlu1 %504  ;;  %v534_v12 = vsel %vm529_vm9, %v501_v50, %v533_v63  ;;  %v402_v50 = vsel %vm394_vm3, %v388_v40, %v389_v36  ;;  %v383_v57 = vrot.slane %v3067_v28, 4 }
 0x104   : > { %v522_v61 = vrot.slane %v505_v60, 4  ;;  %v403_v49 = vsel %vm396_vm10, %v3037_v6, %v402_v50  ;;  %1364 = vperm.xlu0 %2661, %v1342_v16  }
 0x106   : > { %v495_v3 = vpop.permute.xlu0 %494  ;;  %v535_v51 = vsel %vm394_vm3, %v522_v61, %v523_v54  ;;  %v385_v54 = vrot.slane %v3075_v33, 4  ;;  %v2556_v33 = vcombine.low %v405_v15, %v407_v46 }
 0x107   : > { %v493_v7 = vpop.permute.xlu1 %492  ;;  %v536_v14 = vsel %vm529_vm9, %v505_v60, %v535_v51  ;;  %v517_v39 = vrot.slane %v495_v3, 4  ;;  %v395_v51 = vsel %vm394_vm3, %v382_v48, %v383_v57 }
 0x108   : > { %v516_v20 = vrot.slane %v493_v7, 4  ;;  %v2561_v26 = vcombine.high %v534_v12, %v536_v14  ;;  %v2560_v29 = vcombine.low %v534_v12, %v536_v14  ;;  %v398_v28 = vsel %vm394_vm3, %v384_v52, %v385_v54 }
 0x109   : > { %v397_v12 = vsel %vm396_vm10, %v3050_v13, %v395_v51  ;;  %v399_v1 = vsel %vm396_vm10, %v3062_v21, %v398_v28  ;;  %v324_v13 = vmul.bf16 %v2922_v18, %v2935_v22  ;;  %v325_v21 = vmul.bf16 %v2922_v18, %v2940_v23 }
 0x10a   : > { %v499_v32 = vpop.permute.xlu0 %498  ;;  %1884 = vmatprep.subr.bf16.mxu0 %v2561_v26  ;;  %v528_v44 = vsel %vm394_vm3, %v516_v20, %v517_v39  ;;  %v326_v20 = vmul.bf16 %v2922_v18, %v290_v53  ;;  %v327_v26 = vmul.bf16 %v2922_v18, %v2927_v19  ;;  %v2553_v31 = vcombine.high %v397_v12, %v399_v1 }
 0x10b   : > { %v519_v41 = vrot.slane %v499_v32, 4  ;;  %1885 = vmatpush1.bf16.msra.mxu0 %v2560_v29  ;;  %v497_v17 = vpop.permute.xlu1 %496  ;;  %v530_v25 = vsel %vm529_vm9, %v493_v7, %v528_v44  ;;  %v2555_v7 = vcombine.high %v401_v0, %v403_v49  ;;  %v2554_v29 = vcombine.low %v401_v0, %v403_v49 }
 0x10c   : > { %v518_v45 = vrot.slane %v497_v17, 4  ;;  %v2552_v19 = vcombine.low %v397_v12, %v399_v1  ;;  %v2549_v46 = vcombine.high %v324_v13, %v325_v21  ;;  %v322_v22 = vmul.bf16 %v2922_v18, %v286_v59 }
 0x10d   : > { %v323_v23 = vmul.bf16 %v2922_v18, %v2955_v27  ;;  %v738_v28 = vrot.slane %v3214_v11, 4  ;;  %v741_v53 = vrot.slane %v3223_v55, 4  ;;  %v737_v59 = vrot.slane %v3252_v43, 4 }
 0x10e   : > { %v531_v62 = vsel %vm394_vm3, %v518_v45, %v519_v41  ;;  %v3291_v4 = vpop.permute.xlu0 %845  ;;  %v2551_v41 = vcombine.high %v326_v20, %v327_v26 }
 0x10f   : > { %v532_v56 = vsel %vm529_vm9, %v497_v17, %v531_v62  ;;  %v3299_v58 = vpop.permute.xlu1 %843  ;;  %v2550_v17 = vcombine.low %v326_v20, %v327_v26  ;;  %v868_v54 = vrot.slane %v3291_v4, 4  ;;  %v2547_v51 = vcombine.high %v322_v22, %v323_v23 }
 0x110   : > { %v2558_v60 = vcombine.low %v530_v25, %v532_v56  ;;  %v2559_v61 = vcombine.high %v530_v25, %v532_v56  ;;  %v740_v4 = vrot.slane %v3226_v24, 4  ;;  %v2546_v20 = vcombine.low %v322_v22, %v323_v23 }
 0x112   : > { %v3303_v63 = vpop.permute.xlu0 %849  ;;  %1886 = vmatprep.subr.bf16.mxu0 %v2559_v61 }
 0x113   : > { %1887 = vmatpush1.bf16.msra.mxu0 %v2558_v60  ;;  %v3309_v3 = vpop.permute.xlu1 %847  ;;  %v870_v9 = vrot.slane %v3303_v63, 4  ;;  %v867_v60 = vrot.slane %v3299_v58, 4  ;;  %v2548_v63 = vcombine.low %v324_v13, %v325_v21  ;;  %v753_v13 = vsel %vm394_vm3, %v740_v4, %v741_v53 }
 0x114   : > { %1888 = vmatprep.subr.bf16.mxu0 %v2557_v42  ;;  %v869_v48 = vrot.slane %v3309_v3, 4 }
 0x116   : > { %v995_v5 = vpop.permute.xlu0 %994  ;;  %v882_v42 = vsel %vm394_vm3, %v869_v48, %v870_v9 }
 0x117   : > { %1889 = vmatpush1.bf16.msra.mxu0 %v2556_v33  ;;  %v993_v6 = vpop.permute.xlu1 %992  ;;  %v1009_v14 = vrot.slane %v995_v5, 4  ;;  %v739_v33 = vrot.slane %v3212_v8, 4  ;;  %v879_v5 = vsel %vm394_vm3, %v867_v60, %v868_v54  ;;  %v883_v1 = vsel %vm880_vm12, %v3309_v3, %v882_v42 }
 0x118   : > { %v1008_v39 = vrot.slane %v993_v6, 4  ;;  %1890 = vmatprep.subr.bf16.mxu0 %v2555_v7  ;;  %v881_v55 = vsel %vm880_vm12, %v3299_v58, %v879_v5  ;;  %v734_v3 = vrot.slane %v3240_v35, 4 }
 0x119   : > { %v2577_v21 = vcombine.high %v881_v55, %v883_v1 }
 0x11a   : > { %v999_v2 = vpop.permute.xlu0 %998  ;;  %v1021_v36 = vsel %vm394_vm3, %v1008_v39, %v1009_v14 }
 0x11b   : > { %v1011_v10 = vrot.slane %v999_v2, 4  ;;  %1891 = vmatpush1.bf16.msra.mxu0 %v2554_v29  ;;  %v997_v32 = vpop.permute.xlu1 %996  ;;  %v1022_v62 = vsel %vm1013_vm11, %v993_v6, %v1021_v36  ;;  %v736_v36 = vrot.slane %v3255_v47, 4 }
 0x11c   : > { %v1010_v40 = vrot.slane %v997_v32, 4  ;;  %1892 = vmatprep.subr.bf16.mxu0 %v2553_v31  ;;  %v751_v31 = vsel %vm394_vm3, %v738_v28, %v739_v33  ;;  %v1343_v33 = vld [vmem:[%s3638_s2 + $0x10] sm:$0xff] }
 0x11d   : > { %v749_v22 = vsel %vm394_vm3, %v736_v36, %v737_v59  ;;  %v1349_v36 = vld [vmem:[%s3638_s2 + $0x40] sm:$0xff] }
 0x11e   : > { %v1023_v44 = vsel %vm394_vm3, %v1010_v40, %v1011_v10  ;;  %v987_v45 = vpop.permute.xlu0 %986 }
 0x11f   : > { %v1024_v15 = vsel %vm1013_vm11, %v997_v32, %v1023_v44  ;;  %1893 = vmatpush1.bf16.msra.mxu0 %v2552_v19  ;;  %v985_v50 = vpop.permute.xlu1 %984  ;;  %v1005_v56 = vrot.slane %v987_v45, 4  ;;  %v735_v32 = vrot.slane %v3237_v34, 4  ;;  %v752_v44 = vsel %vm747_vm6, %v3214_v11, %v751_v31 }
 0x120   : > { %v2586_v52 = vcombine.low %v1022_v62, %v1024_v15  ;;  %v2587_v25 = vcombine.high %v1022_v62, %v1024_v15  ;;  %v1004_v57 = vrot.slane %v985_v50, 4  ;;  %1894 = vmatprep.subr.bf16.mxu0 %v2551_v41  ;;  %v754_v45 = vsel %vm747_vm6, %v3226_v24, %v753_v13 }
 0x121   : > { %v2573_v24 = vcombine.high %v752_v44, %v754_v45 }
 0x122   : > { %v991_v18 = vpop.permute.xlu0 %990  ;;  %2003 = vmatprep.subr.bf16.mxu1 %v2587_v25  ;;  %v1017_v0 = vsel %vm394_vm3, %v1004_v57, %v1005_v56  ;;  %v750_v56 = vsel %vm747_vm6, %v3255_v47, %v749_v22 }
 0x123   : > { %v1007_v27 = vrot.slane %v991_v18, 4  ;;  %2004 = vmatpush1.bf16.msra.mxu1 %v2586_v52  ;;  %v989_v61 = vpop.permute.xlu1 %988  ;;  %1895 = vmatpush1.bf16.msra.mxu0 %v2550_v17  ;;  %v1018_v6 = vsel %vm1013_vm11, %v985_v50, %v1017_v0  ;;  %v2576_v17 = vcombine.low %v881_v55, %v883_v1 }
 0x124   : > { %v1006_v49 = vrot.slane %v989_v61, 4  ;;  %1896 = vmatprep.subr.bf16.mxu0 %v2549_v46  ;;  %v746_v46 = vsel %vm394_vm3, %v734_v3, %v735_v32 }
 0x125   : > { %v748_v25 = vsel %vm747_vm6, %v3240_v35, %v746_v46  ;;  %v1341_v35 = vld [vmem:[%s3638_s2] sm:$0xff] }
 0x126   : > { %v1019_v7 = vsel %vm394_vm3, %v1006_v49, %v1007_v27  ;;  %v979_v12 = vpop.permute.xlu0 %978  ;;  %v2571_v27 = vcombine.high %v748_v25, %v750_v56  ;;  %1359 = vperm.xlu1 %2660, %v1341_v35   ;;  %v2570_v4 = vcombine.low %v748_v25, %v750_v56  ;;  %v1352_v25 = vld [vmem:[%s3638_s2 + $0x58] sm:$0xff] }
 0x127   : > { %v1020_v14 = vsel %vm1013_vm11, %v989_v61, %v1019_v7  ;;  %v977_v39 = vpop.permute.xlu1 %976  ;;  %1897 = vmatpush1.bf16.msra.mxu0 %v2548_v63  ;;  %v1001_v8 = vrot.slane %v979_v12, 4  ;;  %v1345_v12 = vld [vmem:[%s3638_s2 + $0x20] sm:$0xff] }
 0x128   : > { %v2584_v26 = vcombine.low %v1018_v6, %v1020_v14  ;;  %v2585_v29 = vcombine.high %v1018_v6, %v1020_v14  ;;  %v1000_v2 = vrot.slane %v977_v39, 4  ;;  %1898 = vmatprep.subr.bf16.mxu0 %v2547_v51  ;;  %v1344_v14 = vld [vmem:[%s3638_s2 + $0x18] sm:$0xff]  ;;  %1379 = vperm.xlu0 %2661, %v1345_v12  }
 0x12a   : > { %v983_v10 = vpop.permute.xlu0 %982  ;;  %2005 = vmatprep.subr.bf16.mxu1 %v2585_v29  ;;  %v1012_v58 = vsel %vm394_vm3, %v1000_v2, %v1001_v8  ;;  %1369 = vperm.xlu1 %2660, %v1343_v33   ;;  %v1347_v2 = vld [vmem:[%s3638_s2 + $0x30] sm:$0xff] }
 0x12b   : > { %v1003_v40 = vrot.slane %v983_v10, 4  ;;  %2006 = vmatpush1.bf16.msra.mxu1 %v2584_v26  ;;  %v981_v41 = vpop.permute.xlu1 %980  ;;  %1899 = vmatpush1.bf16.msra.mxu0 %v2546_v20  ;;  %v1014_v23 = vsel %vm1013_vm11, %v977_v39, %v1012_v58  ;;  %v1348_v58 = vld [vmem:[%s3638_s2 + $0x38] sm:$0xff] }
 0x12c   : > { %v1002_v19 = vrot.slane %v981_v41, 4  ;;  %1900 = vmatprep.subr.bf16.mxu0 %v2577_v21  ;;  %v1346_v21 = vld [vmem:[%s3638_s2 + $0x28] sm:$0xff]  ;;  %1389 = vperm.xlu0 %2661, %v1347_v2  }
 0x12e   : > { %v1015_v34 = vsel %vm394_vm3, %v1002_v19, %v1003_v40  ;;  %v862_v43 = vpop.permute.xlu0 %861  ;;  %1374 = vperm.xlu1 %2660, %v1344_v14  }
 0x12f   : > { %v1016_v9 = vsel %vm1013_vm11, %v981_v41, %v1015_v34  ;;  %v860_v48 = vpop.permute.xlu1 %859  ;;  %1901 = vmatpush2.bf16.msra.mxu0 %v2576_v17  ;;  %v876_v50 = vrot.slane %v862_v43, 4  ;;  %v1351_v43 = vld [vmem:[%s3638_s2 + $0x50] sm:$0xff] }
 0x130   : > { %v2582_v62 = vcombine.low %v1014_v23, %v1016_v9  ;;  %v2583_v15 = vcombine.high %v1014_v23, %v1016_v9  ;;  %v875_v11 = vrot.slane %v860_v48, 4  ;;  %1902 = vmatprep.subr.bf16.mxu0 %v2575_v38  ;;  %v2572_v38 = vcombine.low %v752_v44, %v754_v45  ;;  %1399 = vperm.xlu0 %2661, %v1349_v36  }
 0x132   : > { %v866_v52 = vpop.permute.xlu0 %865  ;;  %2007 = vmatprep.subr.bf16.mxu1 %v2583_v15  ;;  %v888_v60 = vsel %vm394_vm3, %v875_v11, %v876_v50  ;;  %1384 = vperm.xlu1 %2660, %v1346_v21   ;;  %v1353_v11 = vld [vmem:[%s3638_s2 + $0x60] sm:$0xff] }
 0x133   : > { %v878_v57 = vrot.slane %v866_v52, 4  ;;  %2008 = vmatpush1.bf16.msra.mxu1 %v2582_v62  ;;  %v864_v54 = vpop.permute.xlu1 %863  ;;  %1903 = vmatpush2.bf16.msra.mxu0 %v2574_v37  ;;  %v889_v47 = vsel %vm880_vm12, %v860_v48, %v888_v60  ;;  %v1350_v48 = vld [vmem:[%s3638_s2 + $0x48] sm:$0xff] }
 0x134   : > { %v877_v18 = vrot.slane %v864_v54, 4  ;;  %1904 = vmatprep.subr.bf16.mxu0 %v2573_v24  ;;  %1409 = vperm.xlu0 %2661, %v1351_v43  }
 0x136   : > { %v890_v61 = vsel %vm394_vm3, %v877_v18, %v878_v57  ;;  %v644_v63 = vpop.permute.xlu0 %643  ;;  %1394 = vperm.xlu1 %2660, %v1348_v58  }
 0x137   : > { %v891_v42 = vsel %vm880_vm12, %v864_v54, %v890_v61  ;;  %v642_v0 = vpop.permute.xlu1 %641  ;;  %1905 = vmatpush2.bf16.msra.mxu0 %v2572_v38  ;;  %v658_v51 = vrot.slane %v644_v63, 4  ;;  %v1355_v38 = vld [vmem:[%s3638_s2 + $0x70] sm:$0xff] }
 0x138   : > { %v2580_v37 = vcombine.low %v889_v47, %v891_v42  ;;  %v2581_v49 = vcombine.high %v889_v47, %v891_v42  ;;  %v657_v28 = vrot.slane %v642_v0, 4  ;;  %1906 = vmatprep.subr.bf16.mxu0 %v2571_v27  ;;  %1419 = vperm.xlu0 %2661, %v1353_v11   ;;  %v1354_v47 = vld [vmem:[%s3638_s2 + $0x68] sm:$0xff] }
 0x13a   : > { %v648_v53 = vpop.permute.xlu0 %647  ;;  %2009 = vmatprep.subr.bf16.mxu1 %v2581_v49  ;;  %v670_v1 = vsel %vm394_vm3, %v657_v28, %v658_v51  ;;  %1404 = vperm.xlu1 %2660, %v1350_v48   ;;  %v1356_v49 = vld [vmem:[%s3638_s2 + $0x78] sm:$0xff] }
 0x13b   : > { %v660_v5 = vrot.slane %v648_v53, 4  ;;  %2010 = vmatpush1.bf16.msra.mxu1 %v2580_v37  ;;  %v646_v7 = vpop.permute.xlu1 %645  ;;  %1907 = vmatpush2.bf16.msra.mxu0 %v2570_v4  ;;  %v671_v26 = vsel %vm662_vm13, %v642_v0, %v670_v1 }
 0x13c   : > { %v659_v6 = vrot.slane %v646_v7, 4  ;;  %1429 = vperm.xlu0 %2661, %v1355_v38   ;;  %v2662_v38 = vld [vmem:[%s3637_s1] ss:$16 sps:$4 sm:$0xff]  }
 0x13e   : > { %v672_v39 = vsel %vm394_vm3, %v659_v6, %v660_v5  ;;  %v854_v20 = vpop.permute.xlu0 %853  ;;  %1414 = vperm.xlu1 %2660, %v1352_v25  }
 0x13f   : > { %v673_v29 = vsel %vm662_vm13, %v646_v7, %v672_v39  ;;  %v852_v8 = vpop.permute.xlu1 %851  ;;  %v872_v13 = vrot.slane %v854_v20, 4 }
 0x140   : > { %v2568_v55 = vcombine.low %v671_v26, %v673_v29  ;;  %v2569_v31 = vcombine.high %v671_v26, %v673_v29  ;;  %v871_v3 = vrot.slane %v852_v8, 4 }
 0x142   : > { %v858_v10 = vpop.permute.xlu0 %857  ;;  %1908 = vmatprep.subr.bf16.mxu0 %v2569_v31  ;;  %v884_v40 = vsel %vm394_vm3, %v871_v3, %v872_v13  ;;  %1424 = vperm.xlu1 %2660, %v1354_v47  }
 0x143   : > { %v874_v32 = vrot.slane %v858_v10, 4  ;;  %v856_v59 = vpop.permute.xlu1 %855  ;;  %1909 = vmatpush2.bf16.msra.mxu0 %v2568_v55  ;;  %v885_v44 = vsel %vm880_vm12, %v852_v8, %v884_v40 }
 0x144   : > { %v873_v41 = vrot.slane %v856_v59, 4 }
 0x146   : > { %v886_v19 = vsel %vm394_vm3, %v873_v41, %v874_v32  ;;  %v636_v17 = vpop.permute.xlu0 %635  ;;  %1434 = vperm.xlu1 %2660, %v1356_v49   ;;  %v2667_v49 = vld [vmem:[%s3637_s1 + $0x8] ss:$16 sps:$4 sm:$0xff]  }
 0x147   : > { %v887_v45 = vsel %vm880_vm12, %v856_v59, %v886_v19  ;;  %v634_v34 = vpop.permute.xlu1 %633  ;;  %v654_v23 = vrot.slane %v636_v17, 4 }
 0x148   : > { %v2578_v46 = vcombine.low %v885_v44, %v887_v45  ;;  %v2579_v22 = vcombine.high %v885_v44, %v887_v45  ;;  %v653_v9 = vrot.slane %v634_v34, 4 }
 0x14a   : > { %v640_v62 = vpop.permute.xlu0 %639  ;;  %2011 = vmatprep.subr.bf16.mxu1 %v2579_v22  ;;  %v666_v24 = vsel %vm394_vm3, %v653_v9, %v654_v23 }
 0x14b   : > { %v656_v15 = vrot.slane %v640_v62, 4  ;;  %2012 = vmatpush1.bf16.msra.mxu1 %v2578_v46  ;;  %v638_v50 = vpop.permute.xlu1 %637  ;;  %v667_v54 = vsel %vm662_vm13, %v634_v34, %v666_v24 }
 0x14c   : > { %v655_v52 = vrot.slane %v638_v50, 4 }
 0x14e   : > { %v668_v56 = vsel %vm394_vm3, %v655_v52, %v656_v15  ;;  %v1213_v57 = vpop.permute.xlu0 %1212 }
 0x14f   : > { %v669_v60 = vsel %vm662_vm13, %v638_v50, %v668_v56  ;;  %v1211_v18 = vpop.permute.xlu1 %1210  ;;  %v1227_v63 = vrot.slane %v1213_v57, 4 }
 0x150   : > { %v2566_v27 = vcombine.low %v667_v54, %v669_v60  ;;  %v2567_v61 = vcombine.high %v667_v54, %v669_v60  ;;  %v1226_v35 = vrot.slane %v1211_v18, 4 }
 0x152   : > { %v1217_v42 = vpop.permute.xlu0 %1216  ;;  %1910 = vmatprep.subr.bf16.mxu0 %v2567_v61  ;;  %v1239_v16 = vsel %vm394_vm3, %v1226_v35, %v1227_v63  ;;  %v2665_v63 = vld [vmem:[%s3637_s1 + $0x24] ss:$16 sps:$4 sm:$0xff]  }
 0x153   : > { %v1229_v0 = vrot.slane %v1217_v42, 4  ;;  %v1215_v30 = vpop.permute.xlu1 %1214  ;;  %1911 = vmatpush2.bf16.msra.mxu0 %v2566_v27  ;;  %v1240_v4 = vsel %vm1231_vm14, %v1211_v18, %v1239_v16 }
 0x154   : > { %v1228_v37 = vrot.slane %v1215_v30, 4 }
 0x156   : > { %v1241_v51 = vsel %vm394_vm3, %v1228_v37, %v1229_v0  ;;  %v628_v28 = vpop.permute.xlu0 %627 }
 0x157   : > { %v1242_v33 = vsel %vm1231_vm14, %v1215_v30, %v1241_v51  ;;  %v626_v53 = vpop.permute.xlu1 %625  ;;  %v650_v12 = vrot.slane %v628_v28, 4  ;;  %v2670_v51 = vld [vmem:[%s3637_s1 + $0x20] ss:$16 sps:$4 sm:$0xff]   ;;  %v2671_v28 = vld [vmem:[%s3637_s1 + $0x44] ss:$16 sps:$4 sm:$0xff]  }
 0x158   : > { %v2598_v5 = vcombine.low %v1240_v4, %v1242_v33  ;;  %v2599_v7 = vcombine.high %v1240_v4, %v1242_v33  ;;  %v649_v1 = vrot.slane %v626_v53, 4  ;;  %v2673_v4 = vld [vmem:[%s3637_s1 + $0x2c] ss:$16 sps:$4 sm:$0xff]   ;;  %v2675_v33 = vld [vmem:[%s3637_s1 + $0x40] ss:$16 sps:$4 sm:$0xff]  }
 0x15a   : > { %v632_v6 = vpop.permute.xlu0 %631  ;;  %2023 = vmatprep.subr.bf16.mxu1 %v2599_v7  ;;  %v661_v20 = vsel %vm394_vm3, %v649_v1, %v650_v12  ;;  %v2679_v7 = vld [vmem:[%s3637_s1 + $0x4c] ss:$16 sps:$4 sm:$0xff]   ;;  %v2681_v12 = vld [vmem:[%s3637_s1 + $0x60] ss:$16 sps:$4 sm:$0xff]   ;;  %v2682_v1 = vld [vmem:[%s3637_s1 + $0x48] ss:$16 sps:$4 sm:$0xff]  }
 0x15b   : > { %v652_v14 = vrot.slane %v632_v6, 4  ;;  %2024 = vmatpush2.bf16.msra.mxu1 %v2598_v5  ;;  %v630_v39 = vpop.permute.xlu1 %629  ;;  %v663_v2 = vsel %vm662_vm13, %v626_v53, %v661_v20  ;;  %v2676_v53 = vld [vmem:[%s3637_s1 + $0x28] ss:$16 sps:$4 sm:$0xff]   ;;  %v2677_v5 = vld [vmem:[%s3637_s1 + $0x64] ss:$16 sps:$4 sm:$0xff]  }
 0x15c   : > { %v651_v26 = vrot.slane %v630_v39, 4  ;;  %v2683_v6 = vld [vmem:[%s3637_s1 + $0x84] ss:$16 sps:$4 sm:$0xff]   ;;  %v2688_v20 = vld [vmem:[%s3637_s1 + $0x68] ss:$16 sps:$4 sm:$0xff]  }
 0x15e   : > { %v664_v29 = vsel %vm394_vm3, %v651_v26, %v652_v14  ;;  %v1205_v8 = vpop.permute.xlu0 %1204  ;;  %v2685_v14 = vld [vmem:[%s3637_s1 + $0x6c] ss:$16 sps:$4 sm:$0xff]   ;;  %v2689_v26 = vld [vmem:[%s3637_s1 + $0xa4] ss:$16 sps:$4 sm:$0xff]  }
 0x15f   : > { %v665_v55 = vsel %vm662_vm13, %v630_v39, %v664_v29  ;;  %v1203_v31 = vpop.permute.xlu1 %1202  ;;  %v1223_v21 = vrot.slane %v1205_v8, 4  ;;  %v2687_v39 = vld [vmem:[%s3637_s1 + $0x80] ss:$16 sps:$4 sm:$0xff]   ;;  %v2691_v29 = vld [vmem:[%s3637_s1 + $0x8c] ss:$16 sps:$4 sm:$0xff]  }
 0x160   : > { %v2564_v13 = vcombine.low %v663_v2, %v665_v55  ;;  %v2565_v3 = vcombine.high %v663_v2, %v665_v55  ;;  %v1222_v10 = vrot.slane %v1203_v31, 4  ;;  %v2693_v8 = vld [vmem:[%s3637_s1 + $0xa0] ss:$16 sps:$4 sm:$0xff]   ;;  %v2694_v2 = vld [vmem:[%s3637_s1 + $0x88] ss:$16 sps:$4 sm:$0xff]  }
 0x161   : > { %v2695_v55 = vld [vmem:[%s3637_s1 + $0xc4] ss:$16 sps:$4 sm:$0xff]  }
 0x162   : > { %v1209_v32 = vpop.permute.xlu0 %1208  ;;  %1912 = vmatprep.subr.bf16.mxu0 %v2565_v3  ;;  %v1235_v40 = vsel %vm394_vm3, %v1222_v10, %v1223_v21  ;;  %v2700_v3 = vld [vmem:[%s3637_s1 + $0xa8] ss:$16 sps:$4 sm:$0xff]   ;;  %v2701_v21 = vld [vmem:[%s3637_s1 + $0xe4] ss:$16 sps:$4 sm:$0xff]   ;;  %v2703_v10 = vld [vmem:[%s3637_s1 + $0xcc] ss:$16 sps:$4 sm:$0xff]  }
 0x163   : > { %v1225_v59 = vrot.slane %v1209_v32, 4  ;;  %v1207_v36 = vpop.permute.xlu1 %1206  ;;  %1913 = vmatpush2.bf16.msra.mxu0 %v2564_v13  ;;  %v1236_v17 = vsel %vm1231_vm14, %v1203_v31, %v1235_v40  ;;  %v2697_v31 = vld [vmem:[%s3637_s1 + $0xac] ss:$16 sps:$4 sm:$0xff]   ;;  %v2699_v13 = vld [vmem:[%s3637_s1 + $0xc0] ss:$16 sps:$4 sm:$0xff]  }
 0x164   : > { %v1224_v41 = vrot.slane %v1207_v36, 4  ;;  %v2705_v32 = vld [vmem:[%s3637_s1 + $0xe0] ss:$16 sps:$4 sm:$0xff]   ;;  %v2709_v40 = vld [vmem:[%s3637_s1 + $0xe8] ss:$16 sps:$4 sm:$0xff]  }
 0x166   : > { %v1237_v58 = vsel %vm394_vm3, %v1224_v41, %v1225_v59  ;;  %v511_v19 = vpop.permute.xlu0 %510  ;;  %v2706_v59 = vld [vmem:[%s3637_s1 + $0xc8] ss:$16 sps:$4 sm:$0xff]  }
 0x167   : > { %v1238_v44 = vsel %vm1231_vm14, %v1207_v36, %v1237_v58  ;;  %v509_v45 = vpop.permute.xlu1 %508  ;;  %v525_v46 = vrot.slane %v511_v19, 4  ;;  %v2707_v36 = vld [vmem:[%s3637_s1 + $0xec] ss:$16 sps:$4 sm:$0xff]  }
 0x168   : > { %v2596_v34 = vcombine.low %v1236_v17, %v1238_v44  ;;  %v2597_v43 = vcombine.high %v1236_v17, %v1238_v44  ;;  %v524_v22 = vrot.slane %v509_v45, 4 }
 0x16a   : > { %v515_v23 = vpop.permute.xlu0 %514  ;;  %2025 = vmatprep.subr.bf16.mxu1 %v2597_v43  ;;  %v537_v62 = vsel %vm394_vm3, %v524_v22, %v525_v46 }
 0x16b   : > { %v527_v9 = vrot.slane %v515_v23, 4  ;;  %2026 = vmatpush2.bf16.msra.mxu1 %v2596_v34  ;;  %v513_v48 = vpop.permute.xlu1 %512  ;;  %v538_v24 = vsel %vm529_vm9, %v509_v45, %v537_v62 }
 0x16c   : > { %v526_v15 = vrot.slane %v513_v48, 4 }
 0x16e   : > { %v539_v50 = vsel %vm394_vm3, %v526_v15, %v527_v9  ;;  %v1197_v11 = vpop.permute.xlu0 %1196 }
 0x16f   : > { %v540_v52 = vsel %vm529_vm9, %v513_v48, %v539_v50  ;;  %v1195_v25 = vpop.permute.xlu1 %1194  ;;  %v1219_v54 = vrot.slane %v1197_v11, 4 }
 0x170   : > { %v2562_v56 = vcombine.low %v538_v24, %v540_v52  ;;  %v2563_v57 = vcombine.high %v538_v24, %v540_v52  ;;  %v1218_v60 = vrot.slane %v1195_v25, 4 }
 0x172   : > { %v1201_v18 = vpop.permute.xlu0 %1200  ;;  %1914 = vmatprep.subr.bf16.mxu0 %v2563_v57  ;;  %v1230_v35 = vsel %vm394_vm3, %v1218_v60, %v1219_v54 }
 0x173   : > { %v1221_v27 = vrot.slane %v1201_v18, 4  ;;  %v1199_v61 = vpop.permute.xlu1 %1198  ;;  %1915 = vmatpush2.bf16.msra.mxu0 %v2562_v56  ;;  %v1232_v0 = vsel %vm1231_vm14, %v1195_v25, %v1230_v35 }
 0x174   : > { %v1220_v47 = vrot.slane %v1199_v61, 4 }
 0x176   : > { %v1233_v42 = vsel %vm394_vm3, %v1220_v47, %v1221_v27  ;;  %1917 = vmatmul.mubr.bf16.vlgmr.msra.gmra.mxu0 %v2662_v38 }
 0x177   : > { %v1234_v30 = vsel %vm1231_vm14, %v1199_v61, %v1233_v42  ;;  %1926 = vmatprep.mubr.bf16.mxu0 %v2665_v63 }
 0x178   : > { %v2594_v16 = vcombine.low %v1232_v0, %v1234_v30  ;;  %v2595_v37 = vcombine.high %v1232_v0, %v1234_v30 }
 0x17a   : > { %2027 = vmatprep.subr.bf16.mxu1 %v2595_v37 }
 0x17b   : > { %2028 = vmatpush2.bf16.msra.mxu1 %v2594_v16 }
 0x17e   : > { %1927 = vmatmul.mubr.bf16.gmra.mxu0 %v2670_v51  ;;  %2030 = vmatmul.mubr.bf16.vlgmr.msra.gmra.mxu1 %v2667_v49 }
 0x17f   : > { %1936 = vmatprep.mubr.bf16.mxu0 %v2671_v28  ;;  %2601 = vmatprep.mubr.msk.bf16.mxu1 %vm1859_vm8, %v2673_v4  ;;  %v1365_v23 = vpop.permute.xlu0 %1364 }
 0x186   : > { %1937 = vmatmul.mubr.bf16.gmra.mxu0 %v2675_v33  ;;  %2040 = vmatmul.mubr.bf16.gmra.mxu1 %v2676_v53 }
 0x187   : > { %1946 = vmatprep.mubr.bf16.mxu0 %v2677_v5  ;;  %2602 = vmatprep.mubr.msk.bf16.mxu1 %vm1859_vm8, %v2679_v7 }
 0x18e   : > { %1947 = vmatmul.mubr.bf16.gmra.mxu0 %v2681_v12  ;;  %2050 = vmatmul.mubr.bf16.gmra.mxu1 %v2682_v1 }
 0x18f   : > { %1956 = vmatprep.mubr.bf16.mxu0 %v2683_v6  ;;  %2603 = vmatprep.mubr.msk.bf16.mxu1 %vm1859_vm8, %v2685_v14 }
 0x196   : > { %1957 = vmatmul.mubr.bf16.gmra.mxu0 %v2687_v39  ;;  %2060 = vmatmul.mubr.bf16.gmra.mxu1 %v2688_v20 }
 0x197   : > { %1966 = vmatprep.mubr.bf16.mxu0 %v2689_v26  ;;  %2604 = vmatprep.mubr.msk.bf16.mxu1 %vm1859_vm8, %v2691_v29 }
 0x19e   : > { %1967 = vmatmul.mubr.bf16.gmra.mxu0 %v2693_v8  ;;  %2070 = vmatmul.mubr.bf16.gmra.mxu1 %v2694_v2 }
 0x19f   : > { %1976 = vmatprep.mubr.bf16.mxu0 %v2695_v55  ;;  %2605 = vmatprep.mubr.msk.bf16.mxu1 %vm1859_vm8, %v2697_v31 }
 0x1a1   : > { %v1360_v44 = vpop.permute.xlu1 %1359 }
 0x1a3   : > { %v1380_v38 = vpop.permute.xlu0 %1379 }
 0x1a5   : > { %v1370_v62 = vpop.permute.xlu1 %1369 }
 0x1a6   : > { %1977 = vmatmul.mubr.bf16.gmra.mxu0 %v2699_v13  ;;  %2080 = vmatmul.mubr.bf16.gmra.mxu1 %v2700_v3 }
 0x1a7   : > { %1986 = vmatprep.mubr.bf16.mxu0 %v2701_v21  ;;  %2606 = vmatprep.mubr.msk.bf16.mxu1 %vm1859_vm8, %v2703_v10 }
 0x1a9   : > { %v1375_v47 = vpop.permute.xlu1 %1374 }
 0x1ad   : > { %v1385_v2 = vpop.permute.xlu1 %1384 }
 0x1ae   : > { %1987 = vmatmul.mubr.bf16.gmra.mxu0 %v2705_v32  ;;  %2090 = vmatmul.mubr.bf16.gmra.mxu1 %v2706_v59  ;;  %v1390_v32 = vpop.permute.xlu0 %1389 }
 0x1af   : > { %2607 = vmatprep.mubr.msk.bf16.mxu1 %vm1859_vm8, %v2707_v36 }
 0x1b6   : > { %2100 = vmatmul.mubr.bf16.gmra.mxu1 %v2709_v40 }
 0x236   : > { %v1918_v41 = vpop.f32.mrf.mxu0 }
 0x237   : > { %v1919_v43 = vadd.f32 %v1918_v41, %v1360_v44 }
 0x238   : > { %v1920_v58 = vpop.f32.mrf.mxu0 }
 0x239   : > { %v1921_v15 = vadd.f32 %v1920_v58, %v1360_v44 }
 0x23a   : > { %v1922_v19 = vpop.f32.mrf.mxu0 }
 0x23b   : > { %v1923_v52 = vadd.f32 %v1922_v19, %v1365_v23 }
 0x23c   : > { %v1924_v17 = vpop.f32.mrf.mxu0 }
 0x23d   : > { %v1925_v25 = vadd.f32 %v1924_v17, %v1365_v23 }
 0x23e   : > { %v1928_v45 = vpop.f32.mrf.mxu0  ;;  %v2031_v34 = vpop.f32.mrf.mxu1 }
 0x23f   : > { %v2032_v50 = vadd.f32 %v2031_v34, %v1919_v43  ;;  %v1929_v56 = vadd.f32 %v1928_v45, %v1370_v62 }
 0x240   : > { %v2033_v46 = vpop.f32.mrf.mxu1  ;;  %v1930_v22 = vpop.f32.mrf.mxu0 }
 0x241   : > { %v2034_v57 = vadd.f32 %v2033_v46, %v1921_v15  ;;  %v2608_v27 = vmul.f32 -1.442695, %v2032_v50  ;;  %v1931_v42 = vadd.f32 %v1930_v22, %v1370_v62  ;;  %v1395_v15 = vpop.permute.xlu1 %1394 }
 0x242   : > { %v1932_v9 = vpop.f32.mrf.mxu0  ;;  %v2035_v48 = vpop.f32.mrf.mxu1 }
 0x243   : > { %v2036_v18 = vadd.f32 %v2035_v48, %v1923_v52  ;;  %v2609_v0 = vmul.f32 -1.442695, %v2034_v57  ;;  %v1933_v30 = vadd.f32 %v1932_v9, %v1375_v47  ;;  %2710 = vpow2.f32 %v2608_v27 }
 0x244   : > { %v2037_v11 = vpop.f32.mrf.mxu1  ;;  %v1934_v24 = vpop.f32.mrf.mxu0 }
 0x245   : > { %v2038_v61 = vadd.f32 %v2037_v11, %v1925_v25  ;;  %v2610_v51 = vmul.f32 -1.442695, %v2036_v18  ;;  %2712 = vpow2.f32 %v2609_v0  ;;  %v1935_v19 = vadd.f32 %v1934_v24, %v1375_v47 }
 0x246   : > { %v1938_v54 = vpop.f32.mrf.mxu0  ;;  %v2041_v60 = vpop.f32.mrf.mxu1 }
 0x247   : > { %v2042_v16 = vadd.f32 %v2041_v60, %v1929_v56  ;;  %v1939_v4 = vadd.f32 %v1938_v54, %v1380_v38  ;;  %v2611_v33 = vmul.f32 -1.442695, %v2038_v61  ;;  %2714 = vpow2.f32 %v2610_v51  ;;  %v1400_v61 = vpop.permute.xlu0 %1399 }
 0x248   : > { %v2043_v63 = vpop.f32.mrf.mxu1  ;;  %v1940_v35 = vpop.f32.mrf.mxu0 }
 0x249   : > { %v2044_v28 = vadd.f32 %v2043_v63, %v1931_v42  ;;  %v2612_v12 = vmul.f32 -1.442695, %v2042_v16  ;;  %v1941_v39 = vadd.f32 %v1940_v35, %v1380_v38  ;;  %2716 = vpow2.f32 %v2611_v33 }
 0x24a   : > { %v1942_v37 = vpop.f32.mrf.mxu0  ;;  %v2045_v49 = vpop.f32.mrf.mxu1 }
 0x24b   : > { %v2046_v53 = vadd.f32 %v2045_v49, %v1933_v30  ;;  %v2613_v14 = vmul.f32 -1.442695, %v2044_v28  ;;  %2718 = vpow2.f32 %v2612_v12  ;;  %v1943_v31 = vadd.f32 %v1942_v37, %v1385_v2 }
 0x24c   : > { %v2047_v5 = vpop.f32.mrf.mxu1  ;;  %v1944_v7 = vpop.f32.mrf.mxu0 }
 0x24d   : > { %v2614_v26 = vmul.f32 -1.442695, %v2046_v53  ;;  %2720 = vpow2.f32 %v2613_v14  ;;  %v1945_v10 = vadd.f32 %v1944_v7, %v1385_v2  ;;  %v2048_v43 = vadd.f32 %v2047_v5, %v1935_v19 }
 0x24e   : > { %v1948_v1 = vpop.f32.mrf.mxu0  ;;  %v2051_v6 = vpop.f32.mrf.mxu1 }
 0x24f   : > { %v2052_v20 = vadd.f32 %v2051_v6, %v1939_v4  ;;  %2722 = vpow2.f32 %v2614_v26  ;;  %v1949_v59 = vadd.f32 %v1948_v1, %v1390_v32  ;;  %v2615_v56 = vmul.f32 -1.442695, %v2048_v43 }
 0x250   : > { %v2053_v29 = vpop.f32.mrf.mxu1  ;;  %v1950_v8 = vpop.f32.mrf.mxu0 }
 0x251   : > { %v2054_v55 = vadd.f32 %v2053_v29, %v1941_v39  ;;  %v2616_v13 = vmul.f32 -1.442695, %v2052_v20  ;;  %v1951_v46 = vadd.f32 %v1950_v8, %v1390_v32  ;;  %v2711_v62 = vpop.eup %2710  ;;  %v1405_v20 = vpop.permute.xlu1 %1404 }
 0x252   : > { %v1952_v3 = vpop.f32.mrf.mxu0  ;;  %v2055_v21 = vpop.f32.mrf.mxu1  ;;  %v2174_v60 = vadd.f32 1.0, %v2711_v62 }
 0x253   : > { %v2617_v36 = vmul.f32 -1.442695, %v2054_v55  ;;  %v2056_v40 = vadd.f32 %v2055_v21, %v1943_v31  ;;  %2724 = vpow2.f32 %v2616_v13  ;;  %v2713_v24 = vpop.eup %2712  ;;  %v1953_v57 = vadd.f32 %v1952_v3, %v1395_v15 }
 0x254   : > { %v2057_v41 = vpop.f32.mrf.mxu1  ;;  %v1954_v58 = vpop.f32.mrf.mxu0  ;;  %v2175_v47 = vadd.f32 1.0, %v2713_v24 }
 0x255   : > { %v2058_v17 = vadd.f32 %v2057_v41, %v1945_v10  ;;  %v2618_v44 = vmul.f32 -1.442695, %v2056_v40  ;;  %2726 = vpow2.f32 %v2617_v36  ;;  %v2715_v54 = vpop.eup %2714  ;;  %v1955_v37 = vadd.f32 %v1954_v58, %v1395_v15  ;;  %v1410_v40 = vpop.permute.xlu0 %1409 }
 0x256   : > { %v1958_v45 = vpop.f32.mrf.mxu0  ;;  %v2061_v34 = vpop.f32.mrf.mxu1  ;;  %v2176_v16 = vadd.f32 1.0, %v2715_v54 }
 0x257   : > { %v2619_v22 = vmul.f32 -1.442695, %v2058_v17  ;;  %v2062_v23 = vadd.f32 %v2061_v34, %v1949_v59  ;;  %2728 = vpow2.f32 %v2618_v44  ;;  %v2717_v27 = vpop.eup %2716  ;;  %v1959_v49 = vadd.f32 %v1958_v45, %v1400_v61  ;;  %v1415_v15 = vpop.permute.xlu1 %1414 }
 0x258   : > { %v2063_v9 = vpop.f32.mrf.mxu1  ;;  %v1960_v48 = vpop.f32.mrf.mxu0  ;;  %v2177_v28 = vadd.f32 1.0, %v2717_v27 }
 0x259   : > { %v2064_v50 = vadd.f32 %v2063_v9, %v1951_v46  ;;  %v2620_v11 = vmul.f32 -1.442695, %v2062_v23  ;;  %2730 = vpow2.f32 %v2619_v22  ;;  %v2719_v30 = vpop.eup %2718  ;;  %v1961_v26 = vadd.f32 %v1960_v48, %v1400_v61  ;;  %v1420_v54 = vpop.permute.xlu0 %1419 }
 0x25a   : > { %v1962_v52 = vpop.f32.mrf.mxu0  ;;  %v2065_v25 = vpop.f32.mrf.mxu1  ;;  %v2178_v12 = vadd.f32 1.0, %v2719_v30 }
 0x25b   : > { %v2621_v63 = vmul.f32 -1.442695, %v2064_v50  ;;  %v2066_v35 = vadd.f32 %v2065_v25, %v1953_v57  ;;  %2732 = vpow2.f32 %v2620_v11  ;;  %v2721_v51 = vpop.eup %2720  ;;  %v1963_v13 = vadd.f32 %v1962_v52, %v1405_v20 }
 0x25c   : > { %v1964_v18 = vpop.f32.mrf.mxu0  ;;  %v2067_v38 = vpop.f32.mrf.mxu1  ;;  %2734 = vpow2.f32 %v2615_v56  ;;  %v2179_v39 = vadd.f32 1.0, %v2721_v51 }
 0x25d   : > { %2736 = vrcp.f32 %v2174_v60  ;;  %v2723_v53 = vpop.eup %2722  ;;  %v2622_v5 = vmul.f32 -1.442695, %v2066_v35  ;;  %v2068_v7 = vadd.f32 %v2067_v38, %v1955_v37  ;;  %v1965_v41 = vadd.f32 %v1964_v18, %v1405_v20 }
 0x25e   : > { %v1968_v42 = vpop.f32.mrf.mxu0  ;;  %v2071_v0 = vpop.f32.mrf.mxu1  ;;  %2738 = vpow2.f32 %v2621_v63  ;;  %v2180_v8 = vadd.f32 1.0, %v2723_v53 }
 0x25f   : > { %2740 = vrcp.f32 %v2175_v47  ;;  %v2072_v29 = vadd.f32 %v2071_v0, %v1959_v49  ;;  %v2623_v3 = vmul.f32 -1.442695, %v2068_v7  ;;  %v1969_v43 = vadd.f32 %v1968_v42, %v1410_v40 }
 0x260   : > { %v1970_v4 = vpop.f32.mrf.mxu0  ;;  %v2073_v33 = vpop.f32.mrf.mxu1  ;;  %2742 = vrcp.f32 %v2176_v16 }
 0x261   : > { %v2725_v14 = vpop.eup %2724  ;;  %2744 = vrcp.f32 %v2177_v28  ;;  %v2074_v21 = vadd.f32 %v2073_v33, %v1961_v26  ;;  %v2624_v58 = vmul.f32 -1.442695, %v2072_v29  ;;  %v1971_v60 = vadd.f32 %v1970_v4, %v1410_v40  ;;  %v1425_v28 = vpop.permute.xlu1 %1424 }
 0x262   : > { %v3558_v1 = vpop.f32.mrf.mxu0  ;;  %v2075_v6 = vpop.f32.mrf.mxu1  ;;  %2746 = vpow2.f32 %v2622_v5  ;;  %v2230_v10 = vadd.f32 1.0, %v2725_v14 }
 0x263   : > { %v2727_v31 = vpop.eup %2726  ;;  %2748 = vrcp.f32 %v2178_v12  ;;  %v2076_v19 = vadd.f32 %v2075_v6, %v1963_v13  ;;  %v2625_v46 = vmul.f32 -1.442695, %v2074_v21  ;;  %v1973_v33 = vadd.f32 %v3558_v1, %v1415_v15  ;;  %v1430_v13 = vpop.permute.xlu0 %1429 }
 0x264   : > { %v3560_v2 = vpop.f32.mrf.mxu0  ;;  %v2077_v55 = vpop.f32.mrf.mxu1  ;;  %2750 = vrcp.f32 %v2179_v39  ;;  %v2231_v17 = vadd.f32 1.0, %v2727_v31 }
 0x265   : > { %v2729_v36 = vpop.eup %2728  ;;  %2752 = vrcp.f32 %v2180_v8  ;;  %v2078_v22 = vadd.f32 %v2077_v55, %v1965_v41  ;;  %v2626_v50 = vmul.f32 -1.442695, %v2076_v19 }
 0x266   : > { %v1978_v32 = vpop.f32.mrf.mxu0  ;;  %v2081_v59 = vpop.f32.mrf.mxu1  ;;  %2754 = vpow2.f32 %v2623_v3  ;;  %v2232_v23 = vadd.f32 1.0, %v2729_v36  ;;  %v1975_v3 = vadd.f32 %v3560_v2, %v1415_v15 }
 0x267   : > { %v2731_v34 = vpop.eup %2730  ;;  %2756 = vrcp.f32 %v2230_v10  ;;  %v2082_v11 = vadd.f32 %v2081_v59, %v1969_v43  ;;  %v2627_v18 = vmul.f32 -1.442695, %v2078_v22  ;;  %v1979_v61 = vadd.f32 %v1978_v32, %v1420_v54  ;;  %v1435_v43 = vpop.permute.xlu1 %1434 }
 0x268   : > { %v1980_v44 = vpop.f32.mrf.mxu0  ;;  %v2083_v45 = vpop.f32.mrf.mxu1  ;;  %2758 = vpow2.f32 %v2624_v58  ;;  %v2233_v25 = vadd.f32 1.0, %v2731_v34 }
 0x269   : > { %v2733_v62 = vpop.eup %2732  ;;  %2760 = vrcp.f32 %v2231_v17  ;;  %v2628_v42 = vmul.f32 -1.442695, %v2082_v11  ;;  %v2084_v0 = vadd.f32 %v2083_v45, %v1971_v60  ;;  %v1981_v16 = vadd.f32 %v1980_v44, %v1420_v54 }
 0x26a   : > { %v1982_v9 = vpop.f32.mrf.mxu0  ;;  %v2085_v48 = vpop.f32.mrf.mxu1  ;;  %2762 = vpow2.f32 %v2625_v46  ;;  %v2234_v27 = vadd.f32 1.0, %v2733_v62 }
 0x26b   : > { %v3562_v52 = vpop.eup %2734  ;;  %2764 = vrcp.f32 %v2232_v23  ;;  %v1983_v7 = vadd.f32 %v1982_v9, %v1425_v28  ;;  %v2629_v39 = vmul.f32 -1.442695, %v2084_v0  ;;  %v2086_v20 = vadd.f32 %v2085_v48, %v1973_v33 }
 0x26c   : > { %v1984_v24 = vpop.f32.mrf.mxu0  ;;  %v2087_v56 = vpop.f32.mrf.mxu1  ;;  %2766 = vpow2.f32 %v2626_v50  ;;  %v2181_v54 = vadd.f32 1.0, %v3562_v52 }
 0x26d   : > { %v3564_v57 = vpop.eup %2736  ;;  %2768 = vrcp.f32 %v2233_v25  ;;  %v1985_v29 = vadd.f32 %v1984_v24, %v1425_v28  ;;  %v2630_v41 = vmul.f32 -1.442695, %v2086_v20  ;;  %v2088_v58 = vadd.f32 %v2087_v56, %v1975_v3  ;;  %v2328_v28 = vld [vmem:[%s3587_s9 + $0x10] sm:$0xff] }
 0x26e   : > { %v2739_v38 = vpop.eup %2738  ;;  %v1988_v63 = vpop.f32.mrf.mxu0  ;;  %2770 = vpow2.f32 %v2627_v18 }
 0x26f   : > { %v2091_v35 = vpop.f32.mrf.mxu1  ;;  %v3566_v47 = vpop.eup %2740  ;;  %v2235_v4 = vadd.f32 1.0, %v2739_v38  ;;  %2772 = vrcp.f32 %v2234_v27  ;;  %v1989_v32 = vadd.f32 %v1988_v63, %v1430_v13  ;;  %v2631_v15 = vmul.f32 -1.442695, %v2088_v58  ;;  %v2326_v27 = vld [vmem:[%s3587_s9] sm:$0xff] }
 0x270   : > { %v3568_v30 = vpop.eup %2742  ;;  %v2092_v37 = vadd.f32 %v2091_v35, %v1979_v61  ;;  %v1990_v53 = vpop.f32.mrf.mxu0  ;;  %2774 = vpow2.f32 %v2628_v42  ;;  %v2327_v42 = vld [vmem:[%s3587_s9 + $0x8] sm:$0xff] }
 0x271   : > { %v2093_v49 = vpop.f32.mrf.mxu1  ;;  %v3570_v51 = vpop.eup %2744  ;;  %v1991_v17 = vadd.f32 %v1990_v53, %v1430_v13 }
 0x272   : > { %v2747_v5 = vpop.eup %2746  ;;  %v2094_v12 = vadd.f32 %v2093_v49, %v1981_v16  ;;  %2776 = vtanh.f32 %v2092_v37  ;;  %v1992_v21 = vpop.f32.mrf.mxu0 }
 0x273   : > { %v2095_v6 = vpop.f32.mrf.mxu1  ;;  %v3573_v14 = vpop.eup %2748  ;;  %2778 = vrcp.f32 %v2235_v4  ;;  %v2236_v1 = vadd.f32 1.0, %v2747_v5  ;;  %v1993_v23 = vadd.f32 %v1992_v21, %v1435_v43 }
 0x274   : > { %v3575_v26 = vpop.eup %2750  ;;  %v2096_v8 = vadd.f32 %v2095_v6, %v1983_v7  ;;  %2780 = vtanh.f32 %v2094_v12  ;;  %v1994_v46 = vpop.f32.mrf.mxu0  ;;  %v2329_v12 = vld [vmem:[%s3587_s9 + $0x18] sm:$0xff] }
 0x275   : > { %v2097_v55 = vpop.f32.mrf.mxu1  ;;  %v3577_v31 = vpop.eup %2752  ;;  %2782 = vpow2.f32 %v2629_v39  ;;  %v1995_v11 = vadd.f32 %v1994_v46, %v1435_v43  ;;  %v2333_v46 = vld [vmem:[%s3587_s9 + $0x38] sm:$0xff] }
 0x276   : > { %v2755_v10 = vpop.eup %2754  ;;  %v2098_v59 = vadd.f32 %v2097_v55, %v1985_v29  ;;  %2784 = vtanh.f32 %v2096_v8 }
 0x277   : > { %v2101_v36 = vpop.f32.mrf.mxu1  ;;  %v2757_v40 = vpop.eup %2756  ;;  %2786 = vrcp.f32 %v2236_v1  ;;  %v2237_v2 = vadd.f32 1.0, %v2755_v10  ;;  %v2330_v1 = vld [vmem:[%s3587_s9 + $0x20] sm:$0xff] }
 0x278   : > { %v2759_v19 = vpop.eup %2758  ;;  %v2102_v44 = vadd.f32 %v2101_v36, %v1989_v32  ;;  %2788 = vtanh.f32 %v2098_v59  ;;  %v2334_v16 = vmul.f32 %v2757_v40, %v2326_v27  ;;  %v2331_v59 = vld [vmem:[%s3587_s9 + $0x28] sm:$0xff] }
 0x279   : > { %v2103_v45 = vpop.f32.mrf.mxu1  ;;  %v2761_v34 = vpop.eup %2760  ;;  %2790 = vpow2.f32 %v2630_v41  ;;  %v2286_v35 = vadd.f32 1.0, %v2759_v19 }
 0x27a   : > { %v2763_v22 = vpop.eup %2762  ;;  %v2104_v9 = vadd.f32 %v2103_v45, %v1991_v17  ;;  %2792 = vtanh.f32 %v2102_v44  ;;  %v2335_v53 = vmul.f32 %v2761_v34, %v2327_v42  ;;  %v2332_v17 = vld [vmem:[%s3587_s9 + $0x30] sm:$0xff] }
 0x27b   : > { %v2105_v48 = vpop.f32.mrf.mxu1  ;;  %v2765_v62 = vpop.eup %2764  ;;  %2794 = vrcp.f32 %v2237_v2  ;;  %v2287_v49 = vadd.f32 1.0, %v2763_v22 }
 0x27c   : > { %v2767_v50 = vpop.eup %2766  ;;  %v2106_v25 = vadd.f32 %v2105_v48, %v1993_v23  ;;  %2796 = vtanh.f32 %v2104_v9  ;;  %v2336_v20 = vmul.f32 %v2765_v62, %v2328_v28 }
 0x27d   : > { %v2107_v24 = vpop.f32.mrf.mxu1  ;;  %v2769_v56 = vpop.eup %2768  ;;  %2798 = vpow2.f32 %v2631_v15 }
 0x27e   : > { %v2771_v60 = vpop.eup %2770  ;;  %v2108_v18 = vadd.f32 %v2107_v24, %v1995_v11  ;;  %2800 = vtanh.f32 %v2106_v25  ;;  %v2337_v3 = vmul.f32 %v2769_v56, %v2329_v12 }
 0x27f   : > { %v2773_v38 = vpop.eup %2772  ;;  %2802 = vrcp.f32 %v2181_v54  ;;  %v2289_v55 = vadd.f32 1.0, %v2771_v60 }
 0x280   : > { %v2775_v61 = vpop.eup %2774  ;;  %2804 = vtanh.f32 %v2108_v18  ;;  %v2338_v40 = vmul.f32 %v2773_v38, %v2330_v1 }
 0x281   : > { %v2777_v63 = vpop.eup %2776  ;;  %2806 = vrcp.f32 %v2286_v35  ;;  %v2290_v32 = vadd.f32 1.0, %v2775_v61 }
 0x282   : > { %v2779_v0 = vpop.eup %2778  ;;  %v2342_v52 = vmul.f32 %v2777_v63, %v3564_v57  ;;  %v2288_v57 = vadd.f32 1.0, %v2767_v50 }
 0x283   : > { %v2781_v37 = vpop.eup %2780  ;;  %v2339_v45 = vmul.f32 %v2779_v0, %v2331_v59 }
 0x284   : > { %v2783_v4 = vpop.eup %2782  ;;  %v2350_v33 = vadd.f32 %v2342_v52, %v2334_v16  ;;  %v2343_v5 = vmul.f32 %v2781_v37, %v3566_v47 }
 0x285   : > { %v2785_v7 = vpop.eup %2784  ;;  %v2291_v19 = vadd.f32 1.0, %v2783_v4 }
 0x286   : > { %v2787_v6 = vpop.eup %2786  ;;  %2808 = vtanh.f32 %v2350_v33  ;;  %2374 = vst [vmem:[%s3597_s11] sm:$0xff] %v2350_v33  ;;  %v2351_v39 = vadd.f32 %v2343_v5, %v2335_v53  ;;  %v2344_v29 = vmul.f32 %v2785_v7, %v3568_v30 }
 0x287   : > { %v2789_v8 = vpop.eup %2788  ;;  %2810 = vrcp.f32 %v2287_v49  ;;  %v2340_v23 = vmul.f32 %v2787_v6, %v2332_v17 }
 0x288   : > { %v2791_v13 = vpop.eup %2790  ;;  %2812 = vtanh.f32 %v2351_v39  ;;  %2375 = vst [vmem:[%s3597_s11 + $0x8] sm:$0xff] %v2351_v39  ;;  %v2352_v47 = vadd.f32 %v2344_v29, %v2336_v20  ;;  %v2345_v21 = vmul.f32 %v2789_v8, %v3570_v51 }
 0x289   : > { %v2793_v10 = vpop.eup %2792  ;;  %2814 = vrcp.f32 %v2288_v57  ;;  %v2292_v2 = vadd.f32 1.0, %v2791_v13 }
 0x28a   : > { %v2795_v36 = vpop.eup %2794  ;;  %2816 = vtanh.f32 %v2352_v47  ;;  %2376 = vst [vmem:[%s3597_s11 + $0x10] sm:$0xff] %v2352_v47  ;;  %v2353_v30 = vadd.f32 %v2345_v21, %v2337_v3  ;;  %v2346_v41 = vmul.f32 %v2793_v10, %v3573_v14 }
 0x28b   : > { %v2797_v58 = vpop.eup %2796  ;;  %2818 = vrcp.f32 %v2289_v55  ;;  %v2341_v15 = vmul.f32 %v2795_v36, %v2333_v46 }
 0x28c   : > { %v2799_v44 = vpop.eup %2798  ;;  %2820 = vtanh.f32 %v2353_v30  ;;  %2377 = vst [vmem:[%s3597_s11 + $0x18] sm:$0xff] %v2353_v30  ;;  %v2354_v51 = vadd.f32 %v2346_v41, %v2338_v40  ;;  %v2347_v34 = vmul.f32 %v2797_v58, %v3575_v26 }
 0x28d   : > { %v2801_v43 = vpop.eup %2800  ;;  %2822 = vrcp.f32 %v2290_v32  ;;  %v2293_v62 = vadd.f32 1.0, %v2799_v44 }
 0x28e   : > { %v2803_v22 = vpop.eup %2802  ;;  %2824 = vtanh.f32 %v2354_v51  ;;  %2378 = vst [vmem:[%s3597_s11 + $0x20] sm:$0xff] %v2354_v51  ;;  %v2355_v14 = vadd.f32 %v2347_v34, %v2339_v45  ;;  %v2348_v9 = vmul.f32 %v2801_v43, %v3577_v31 }
 0x28f   : > { %v2805_v48 = vpop.eup %2804  ;;  %2826 = vrcp.f32 %v2291_v19 }
 0x290   : > { %2828 = vtanh.f32 %v2355_v14  ;;  %2379 = vst [vmem:[%s3597_s11 + $0x28] sm:$0xff] %v2355_v14  ;;  %v2356_v26 = vadd.f32 %v2348_v9, %v2340_v23  ;;  %v2349_v50 = vmul.f32 %v2805_v48, %v2803_v22  ;;  %v2807_v11 = vpop.eup %2806 }
 0x291   : > { %2830 = vrcp.f32 %v2292_v2 }
 0x292   : > { %2832 = vtanh.f32 %v2356_v26  ;;  %2380 = vst [vmem:[%s3597_s11 + $0x30] sm:$0xff] %v2356_v26  ;;  %v2357_v25 = vadd.f32 %v2349_v50, %v2341_v15 }
 0x293   : > { %v2809_v24 = vpop.eup %2808  ;;  %2834 = vrcp.f32 %v2293_v62 }
 0x294   : > { %v2811_v31 = vpop.eup %2810  ;;  %v2366_v56 = vmul.f32 %v2809_v24, %v2807_v11  ;;  %2836 = vtanh.f32 %v2357_v25  ;;  %2381 = vst [vmem:[%s3597_s11 + $0x38] sm:$0xff] %v2357_v25 }
 0x295   : > { %v2813_v54 = vpop.eup %2812 }
 0x296   : > { %v2815_v60 = vpop.eup %2814  ;;  %2382 = vst [vmem:[%s3622_s14] sm:$0xff] %v2366_v56  ;;  %v2367_v18 = vmul.f32 %v2813_v54, %v2811_v31 }
 0x297   : > { %v2817_v38 = vpop.eup %2816 }
 0x298   : > { %v2819_v27 = vpop.eup %2818  ;;  %2383 = vst [vmem:[%s3622_s14 + $0x8] sm:$0xff] %v2367_v18  ;;  %v2368_v61 = vmul.f32 %v2817_v38, %v2815_v60 }
 0x299   : > { %v2821_v63 = vpop.eup %2820 }
 0x29a   : > { %v2823_v35 = vpop.eup %2822  ;;  %2384 = vst [vmem:[%s3622_s14 + $0x10] sm:$0xff] %v2368_v61  ;;  %v2369_v42 = vmul.f32 %v2821_v63, %v2819_v27 }
 0x29b   : > { %v2825_v0 = vpop.eup %2824 }
 0x29c   : > { %v2827_v16 = vpop.eup %2826  ;;  %2385 = vst [vmem:[%s3622_s14 + $0x18] sm:$0xff] %v2369_v42  ;;  %v2370_v52 = vmul.f32 %v2825_v0, %v2823_v35 }
 0x29d   : > { %v2829_v37 = vpop.eup %2828 }
 0x29e   : > { %v2831_v49 = vpop.eup %2830  ;;  %2386 = vst [vmem:[%s3622_s14 + $0x20] sm:$0xff] %v2370_v52  ;;  %v2371_v28 = vmul.f32 %v2829_v37, %v2827_v16 }
 0x29f   : > { %v2833_v4 = vpop.eup %2832 }
 0x2a0   : > { %v2835_v33 = vpop.eup %2834  ;;  %2387 = vst [vmem:[%s3622_s14 + $0x28] sm:$0xff] %v2371_v28  ;;  %v2372_v53 = vmul.f32 %v2833_v4, %v2831_v49 }
 0x2a1   : > { %v2837_v5 = vpop.eup %2836 }
 0x2a2   : > { %2388 = vst [vmem:[%s3622_s14 + $0x30] sm:$0xff] %v2372_v53  ;;  %v2373_v7 = vmul.f32 %v2837_v5, %v2835_v33 }
 0x2a4   : > { %2389 = vst [vmem:[%s3622_s14 + $0x38] sm:$0xff] %v2373_v7 }
 0x2a5 PF: > { %s17_s21 = sadd.s32 1, %s2844_s21  }
 0x2a6   : > { %p14_p4 = scmp.ge.s32.totalorder %s17_s21, 4  }
 0x2a8   :  { %16 = sbr.rel (!%p14_p4) target bundleno = 1 (0x1), region = 85 }

</bundles_post_ra>
